<compile_context>
chip_gen: v6e
topology: v6e:2x2x1
jax: 0.10.0
libtpu: 0.0.40
codegen_flags: <defaults>
</compile_context>

<pallas_src>
import functools

import jax
import jax.numpy as jnp
from jax.experimental import pallas as pl
from jax.experimental.pallas import tpu as pltpu


# -----------------------------------------------------------------------------
# Fused kernel: one grid step per encoder layer; layer 0 also does the patch
# embedding + positional add; the last layer stores the output.
# -----------------------------------------------------------------------------
def fused_patch_encoder_kernel(
        patches_ref, w_patch_ref, pos_ref,
        wqkv_ref, bqkv_ref, wo_ref, bo_ref,
        w1_ref, b1_ref, w2_ref, b2_ref,
        g1_ref, be1_ref, g2_ref, be2_ref,
        o_ref, x_scratch,
        *, num_heads, batch, seq, ff_chunk):
    eps = 1e-5
    tokens, emb = o_ref.shape                     # (B*S, E)
    head_dim = emb // num_heads
    mm = w_patch_ref.dtype                        # matmul operand dtype (bf16)
    layer = pl.program_id(0)

    # ---- layer 0 only: patch embedding (stride==kernel conv == matmul) ------
    @pl.when(layer == 0)
    def _():
        xe = jnp.dot(patches_ref[...].astype(mm), w_patch_ref[...],
                     preferred_element_type=jnp.float32)
        x_scratch[...] = xe + pos_ref[...]        # pos already includes conv bias

    x = x_scratch[...]                            # (B*S, E) f32, carried state

    def layer_norm(y, gamma, beta):
        mu = jnp.mean(y, axis=-1, keepdims=True)
        var = jnp.mean((y - mu) ** 2, axis=-1, keepdims=True)
        return (y - mu) * jax.lax.rsqrt(var + eps) * gamma + beta

    # ---- multi-head self attention, batched over (B*H) ----------------------
    # (1/sqrt(head_dim) is folded into the Q projection host-side.)
    qkv = (jnp.dot(x.astype(mm), wqkv_ref[0],
                   preferred_element_type=jnp.float32)
           + bqkv_ref[0]).astype(mm)              # (B*S, 3E) bf16, single cast
    qkv3 = qkv.reshape(batch, seq, 3 * emb)

    def split_heads(base):
        # stack per-head slices onto the batch axis -> (H*B, S, d)
        return jnp.concatenate(
            [qkv3[:, :, base + h * head_dim: base + (h + 1) * head_dim]
             for h in range(num_heads)], axis=0)

    qh = split_heads(0)
    kh = split_heads(emb)
    vh = split_heads(2 * emb)

    s = jnp.einsum('gqd,gkd->gqk', qh, kh,
                   preferred_element_type=jnp.float32)       # (H*B, S, S)
    s = s - jnp.max(s, axis=-1, keepdims=True)
    p = jnp.exp(s)
    # approx reciprocal (EUP slot): ~1e-3 rel error vs exact softmax (OK for inference)
    p = p * pl.reciprocal(jnp.sum(p, axis=-1, keepdims=True), approx=True)
    ctx = jnp.einsum('gqk,gkd->gqd', p.astype(mm), vh,
                     preferred_element_type=jnp.float32)     # (H*B, S, d)
    # un-stack heads back onto the feature axis: (B, S, E) -> (B*S, E)
    ctx = jnp.concatenate(
        [ctx[h * batch:(h + 1) * batch] for h in range(num_heads)], axis=-1)
    ctx = ctx.reshape(tokens, emb).astype(mm)
    attn = jnp.dot(ctx, wo_ref[0],
                   preferred_element_type=jnp.float32) + bo_ref[0]

    # ---- residual + LayerNorm1 (post-norm) -----------------------------------
    y = layer_norm(x + attn, g1_ref[0], be1_ref[0])

    # ---- feed forward (ReLU), tiled over the FF dim, + residual + LayerNorm2 -
    y_mm = y.astype(mm)
    ff = w1_ref.shape[-1]
    h2 = jnp.zeros((tokens, emb), jnp.float32)
    for c in range(0, ff, ff_chunk):              # static unroll (4 chunks)
        h1c = (jnp.dot(y_mm, w1_ref[0, :, c:c + ff_chunk],
                       preferred_element_type=jnp.float32)
               + b1_ref[0, :, c:c + ff_chunk])
        h1c = jnp.maximum(h1c, 0.0).astype(mm)
        h2 = h2 + jnp.dot(h1c, w2_ref[0, c:c + ff_chunk, :],
                          preferred_element_type=jnp.float32)
    h2 = h2 + b2_ref[0]
    x_new = layer_norm(y + h2, g2_ref[0], be2_ref[0])
    x_scratch[...] = x_new

    # TODO(synk): a v7x-only parallel batch grid axis (2 TensorCores) is skipped;
    # on v5e/v6e keeping the whole batch per step avoids extra step overhead.
    @pl.when(layer == pl.num_programs(0) - 1)
    def _():
        o_ref[...] = x_new.astype(o_ref.dtype)


# -----------------------------------------------------------------------------
# Parameter init (deterministic, synthetic — PyTorch-conventional shapes)
# -----------------------------------------------------------------------------
def init_params(key, in_channels, embedding_dim, patch_size, n_embeddings,
                ff_dim, num_layers):
    E = embedding_dim
    keys = jax.random.split(key, 3 + num_layers)
    conv_w = 0.05 * jax.random.normal(
        keys[0], (E, in_channels, patch_size, patch_size), jnp.float32)
    conv_b = 0.05 * jax.random.normal(keys[1], (E,), jnp.float32)
    pos = jax.random.uniform(keys[2], (n_embeddings, E), jnp.float32)  # ~torch.rand

    layers = []
    for i in range(num_layers):
        lk = jax.random.split(keys[3 + i], 8)
        layers.append(dict(
            wqkv=0.05 * jax.random.normal(lk[0], (3 * E, E), jnp.float32),
            bqkv=0.05 * jax.random.normal(lk[1], (1, 3 * E), jnp.float32),
            wo=0.05 * jax.random.normal(lk[2], (E, E), jnp.float32),
            bo=0.05 * jax.random.normal(lk[3], (1, E), jnp.float32),
            w1=0.05 * jax.random.normal(lk[4], (ff_dim, E), jnp.float32),
            b1=0.05 * jax.random.normal(lk[5], (1, ff_dim), jnp.float32),
            w2=0.05 * jax.random.normal(lk[6], (E, ff_dim), jnp.float32),
            b2=0.05 * jax.random.normal(lk[7], (1, E), jnp.float32),
            g1=jnp.ones((1, E), jnp.float32),
            be1=jnp.zeros((1, E), jnp.float32),
            g2=jnp.ones((1, E), jnp.float32),
            be2=jnp.zeros((1, E), jnp.float32),
        ))
    return dict(conv_w=conv_w, conv_b=conv_b, pos=pos, layers=layers)


# -----------------------------------------------------------------------------
# Forward pass (wrapper does only layout plumbing; all compute is in the kernel)
# -----------------------------------------------------------------------------
def patch_encoder_forward(x, params, *, patch_size, num_heads,
                          matmul_dtype=jnp.bfloat16, ff_chunk=256):
    B, C, H, W = x.shape
    p = patch_size
    n_h, n_w = H // p, W // p
    S = n_h * n_w
    E = params["conv_w"].shape[0]
    CP = C * p * p
    layers = params["layers"]
    L = len(layers)
    head_dim = E // num_heads
    assert E % num_heads == 0
    assert params["pos"].shape[0] >= S, "positional encodings shorter than seq"

    # --- host-side glue: extract non-overlapping patches (conv -> matmul) -----
    xp = x.reshape(B, C, n_h, p, n_w, p)
    xp = jnp.transpose(xp, (0, 2, 4, 1, 3, 5))            # (B, n_h, n_w, C, p, p)
    patches = xp.reshape(B * S, CP)                       # token index = b*S + s

    w_patch = params["conv_w"].reshape(E, CP).T.astype(matmul_dtype)   # (CP, E)
    # fold the conv bias into the tiled positional table
    pos_bias = (jnp.tile(params["pos"][:S, :], (B, 1))
                + params["conv_b"].reshape(1, E))          # (B*S, E)

    def stack(name):
        return jnp.stack([lp[name] for lp in layers], axis=0)

    # fold the 1/sqrt(head_dim) attention scale into the Q projection
    scale = 1.0 / (head_dim ** 0.5)
    q_scale = jnp.concatenate([jnp.full((E,), scale, jnp.float32),
                               jnp.ones((2 * E,), jnp.float32)])
    wqkv_t = jnp.transpose(stack("wqkv"), (0, 2, 1)) * q_scale   # (L, E, 3E)
    bqkv = stack("bqkv") * q_scale                               # (L, 1, 3E)
    wo_t = jnp.transpose(stack("wo"), (0, 2, 1))                 # (L, E, E)
    w1_t = jnp.transpose(stack("w1"), (0, 2, 1))                 # (L, E, FF)
    w2_t = jnp.transpose(stack("w2"), (0, 2, 1))                 # (L, FF, E)
    FF = w1_t.shape[-1]

    args = (
        patches, w_patch, pos_bias,
        wqkv_t.astype(matmul_dtype), bqkv,
        wo_t.astype(matmul_dtype), stack("bo"),
        w1_t.astype(matmul_dtype), stack("b1"),
        w2_t.astype(matmul_dtype), stack("b2"),
        stack("g1"), stack("be1"), stack("g2"), stack("be2"),
    )

    def const_spec(a):
        zeros = (0,) * a.ndim
        return pl.BlockSpec(a.shape, lambda l: zeros)       # same block every step

    def per_layer_spec(a):
        tail = (0,) * (a.ndim - 1)
        return pl.BlockSpec((1,) + tuple(a.shape[1:]), lambda l: (l,) + tail)

    in_specs = ([const_spec(a) for a in args[:3]]
                + [per_layer_spec(a) for a in args[3:]])

    kernel = functools.partial(fused_patch_encoder_kernel,
                               num_heads=num_heads, batch=B, seq=S,
                               ff_chunk=min(ff_chunk, FF))

    out2d = pl.pallas_call(
        kernel,
        out_shape=jax.ShapeDtypeStruct((B * S, E), jnp.float32),
        grid=(L,),
        in_specs=in_specs,
        out_specs=pl.BlockSpec((B * S, E), lambda l: (0, 0)),
        scratch_shapes=[pltpu.VMEM((B * S, E), jnp.float32)],
        compiler_params=pltpu.CompilerParams(
            dimension_semantics=("arbitrary",)),
    )(*args)

    # glue: (B*S, E) -> (S, B, E) to match PyTorch's permute(2, 0, 1)
    return out2d.reshape(B, S, E).transpose(1, 0, 2)


# -----------------------------------------------------------------------------
if __name__ == "__main__":
    # Shapes consistent with the module:
    #   input_size=(16, 16), in_channels=4, patch_size=4, embedding_dim=32, heads=4
    B, C, H, W = 2, 4, 16, 16
    patch_size = 4
    embedding_dim = 32
    heads = 4
    ff_dim = 1024          # dim_feedforward hardcoded to 1024 in the module
    num_layers = 4
    n_embeddings = (H * W) // (patch_size ** 2)   # 16

    key = jax.random.PRNGKey(0)
    k_x, k_p = jax.random.split(key)
    x = jax.random.normal(k_x, (B, C, H, W), jnp.float32)
    params = init_params(k_p, C, embedding_dim, patch_size, n_embeddings,
                         ff_dim, num_layers)

    fwd = jax.jit(functools.partial(patch_encoder_forward,
                                    patch_size=patch_size, num_heads=heads))
    out = jax.block_until_ready(fwd(x, params))

    S = n_embeddings
    assert out.shape == (S, B, embedding_dim), out.shape
    assert out.dtype == jnp.float32
    assert bool(jnp.all(jnp.isfinite(out)))
    print("KERNEL_OK")
</pallas_src>

<mosaic_0001>
module attributes {stable_mosaic.version = 11 : i64} {
  func.func @fused_patch_encoder_kernel(%arg0: i32, %arg1: memref<32x64xf32, #tpu.memory_space<vmem>>, %arg2: memref<64x32xbf16, #tpu.memory_space<vmem>>, %arg3: memref<32x32xf32, #tpu.memory_space<vmem>>, %arg4: memref<1x32x96xbf16, #tpu.memory_space<vmem>>, %arg5: memref<1x1x96xf32, #tpu.memory_space<vmem>>, %arg6: memref<1x32x32xbf16, #tpu.memory_space<vmem>>, %arg7: memref<1x1x32xf32, #tpu.memory_space<vmem>>, %arg8: memref<1x32x1024xbf16, #tpu.memory_space<vmem>>, %arg9: memref<1x1x1024xf32, #tpu.memory_space<vmem>>, %arg10: memref<1x1024x32xbf16, #tpu.memory_space<vmem>>, %arg11: memref<1x1x32xf32, #tpu.memory_space<vmem>>, %arg12: memref<1x1x32xf32, #tpu.memory_space<vmem>>, %arg13: memref<1x1x32xf32, #tpu.memory_space<vmem>>, %arg14: memref<1x1x32xf32, #tpu.memory_space<vmem>>, %arg15: memref<1x1x32xf32, #tpu.memory_space<vmem>>, %arg16: memref<32x32xf32, #tpu.memory_space<vmem>>, %arg17: memref<32x32xf32, #tpu.memory_space<vmem>>) attributes {dimension_semantics = [#tpu.dimension_semantics<arbitrary>], iteration_bounds = array<i64: 4>, scalar_prefetch = 0 : i64, scratch_operands = 1 : i64, tpu.core_type = #tpu.core_type<tc>, window_params = [{pipeline_mode = #tpu.pipeline_mode<synchronous>, transform_indices = @transform_0, window_bounds = array<i64: 32, 64>}, {pipeline_mode = #tpu.pipeline_mode<synchronous>, transform_indices = @transform_1, window_bounds = array<i64: 64, 32>}, {pipeline_mode = #tpu.pipeline_mode<synchronous>, transform_indices = @transform_2, window_bounds = array<i64: 32, 32>}, {transform_indices = @transform_3, window_bounds = array<i64: 1, 32, 96>}, {transform_indices = @transform_4, window_bounds = array<i64: 1, 1, 96>}, {transform_indices = @transform_5, window_bounds = array<i64: 1, 32, 32>}, {transform_indices = @transform_6, window_bounds = array<i64: 1, 1, 32>}, {transform_indices = @transform_7, window_bounds = array<i64: 1, 32, 1024>}, {transform_indices = @transform_8, window_bounds = array<i64: 1, 1, 1024>}, {transform_indices = @transform_9, window_bounds = array<i64: 1, 1024, 32>}, {transform_indices = @transform_10, window_bounds = array<i64: 1, 1, 32>}, {transform_indices = @transform_11, window_bounds = array<i64: 1, 1, 32>}, {transform_indices = @transform_12, window_bounds = array<i64: 1, 1, 32>}, {transform_indices = @transform_13, window_bounds = array<i64: 1, 1, 32>}, {transform_indices = @transform_14, window_bounds = array<i64: 1, 1, 32>}, {pipeline_mode = #tpu.pipeline_mode<synchronous>, transform_indices = @transform_15, window_bounds = array<i64: 32, 32>}]} {
    %c0_i32 = arith.constant 0 : i32
    %0 = arith.cmpi eq, %arg0, %c0_i32 : i32
    %1 = arith.extui %0 : i1 to i32
    %c0_i32_0 = arith.constant 0 : i32
    %2 = arith.cmpi ne, %1, %c0_i32_0 : i32
    scf.if %2 {
      %c0_93 = arith.constant 0 : index
      %c0_94 = arith.constant 0 : index
      %176 = vector.load %arg1[%c0_93, %c0_94] : memref<32x64xf32, #tpu.memory_space<vmem>>, vector<32x64xf32>
      %177 = arith.truncf %176 : vector<32x64xf32> to vector<32x64xbf16>
      %c0_95 = arith.constant 0 : index
      %c0_96 = arith.constant 0 : index
      %178 = vector.load %arg2[%c0_95, %c0_96] : memref<64x32xbf16, #tpu.memory_space<vmem>>, vector<64x32xbf16>
      %cst_97 = arith.constant dense<0.000000e+00> : vector<32x32xf32>
      %179 = tpu.matmul %177, %178, %cst_97 {dimension_numbers = #tpu.dot_dimension_numbers<[1], [0], [0], [1], [0, 0, 1, 1], [], []>} : vector<32x64xbf16>, vector<64x32xbf16>, vector<32x32xf32> -> vector<32x32xf32>
      %c0_98 = arith.constant 0 : index
      %c0_99 = arith.constant 0 : index
      %180 = vector.load %arg3[%c0_98, %c0_99] : memref<32x32xf32, #tpu.memory_space<vmem>>, vector<32x32xf32>
      %181 = arith.addf %179, %180 : vector<32x32xf32>
      %c0_100 = arith.constant 0 : index
      %c0_101 = arith.constant 0 : index
      %182 = vector.load %arg17[%c0_100, %c0_101] : memref<32x32xf32, #tpu.memory_space<vmem>>, vector<32x32xf32>
      tpu.vector_store %arg17[%c0_100, %c0_101], %181 {strides = array<i32>} : memref<32x32xf32, #tpu.memory_space<vmem>>, vector<32x32xf32>,
    } else {
    }
    %c0 = arith.constant 0 : index
    %c0_1 = arith.constant 0 : index
    %3 = vector.load %arg17[%c0, %c0_1] : memref<32x32xf32, #tpu.memory_space<vmem>>, vector<32x32xf32>
    %4 = arith.truncf %3 : vector<32x32xf32> to vector<32x32xbf16>
    %c0_2 = arith.constant 0 : index
    %c0_3 = arith.constant 0 : index
    %c0_4 = arith.constant 0 : index
    %5 = vector.load %arg4[%c0_2, %c0_3, %c0_4] : memref<1x32x96xbf16, #tpu.memory_space<vmem>>, vector<1x32x96xbf16>
    %6 = vector.shape_cast %5 : vector<1x32x96xbf16> to vector<32x96xbf16>
    %cst = arith.constant dense<0.000000e+00> : vector<32x96xf32>
    %7 = tpu.matmul %4, %6, %cst {dimension_numbers = #tpu.dot_dimension_numbers<[1], [0], [0], [1], [0, 0, 1, 1], [], []>} : vector<32x32xbf16>, vector<32x96xbf16>, vector<32x96xf32> -> vector<32x96xf32>
    %c0_5 = arith.constant 0 : index
    %c0_6 = arith.constant 0 : index
    %c0_7 = arith.constant 0 : index
    %8 = vector.load %arg5[%c0_5, %c0_6, %c0_7] : memref<1x1x96xf32, #tpu.memory_space<vmem>>, vector<1x1x96xf32>
    %9 = vector.shape_cast %8 : vector<1x1x96xf32> to vector<1x96xf32>
    %10 = vector.broadcast %9 : vector<1x96xf32> to vector<32x96xf32>
    %11 = arith.addf %7, %10 : vector<32x96xf32>
    %12 = arith.truncf %11 : vector<32x96xf32> to vector<32x96xbf16>
    %13 = vector.shape_cast %12 : vector<32x96xbf16> to vector<2x16x96xbf16>
    %14 = vector.extract_strided_slice %13 {offsets = [0, 0, 0], sizes = [2, 16, 8], strides = [1, 1, 1]} : vector<2x16x96xbf16> to vector<2x16x8xbf16>
    %15 = vector.extract_strided_slice %13 {offsets = [0, 0, 8], sizes = [2, 16, 8], strides = [1, 1, 1]} : vector<2x16x96xbf16> to vector<2x16x8xbf16>
    %16 = vector.extract_strided_slice %13 {offsets = [0, 0, 16], sizes = [2, 16, 8], strides = [1, 1, 1]} : vector<2x16x96xbf16> to vector<2x16x8xbf16>
    %17 = vector.extract_strided_slice %13 {offsets = [0, 0, 24], sizes = [2, 16, 8], strides = [1, 1, 1]} : vector<2x16x96xbf16> to vector<2x16x8xbf16>
    %18 = tpu.concatenate %14, %15, %16, %17 in 0 : vector<2x16x8xbf16>, vector<2x16x8xbf16>, vector<2x16x8xbf16>, vector<2x16x8xbf16> -> vector<8x16x8xbf16>
    %19 = vector.extract_strided_slice %13 {offsets = [0, 0, 32], sizes = [2, 16, 8], strides = [1, 1, 1]} : vector<2x16x96xbf16> to vector<2x16x8xbf16>
    %20 = vector.extract_strided_slice %13 {offsets = [0, 0, 40], sizes = [2, 16, 8], strides = [1, 1, 1]} : vector<2x16x96xbf16> to vector<2x16x8xbf16>
    %21 = vector.extract_strided_slice %13 {offsets = [0, 0, 48], sizes = [2, 16, 8], strides = [1, 1, 1]} : vector<2x16x96xbf16> to vector<2x16x8xbf16>
    %22 = vector.extract_strided_slice %13 {offsets = [0, 0, 56], sizes = [2, 16, 8], strides = [1, 1, 1]} : vector<2x16x96xbf16> to vector<2x16x8xbf16>
    %23 = tpu.concatenate %19, %20, %21, %22 in 0 : vector<2x16x8xbf16>, vector<2x16x8xbf16>, vector<2x16x8xbf16>, vector<2x16x8xbf16> -> vector<8x16x8xbf16>
    %24 = vector.extract_strided_slice %13 {offsets = [0, 0, 64], sizes = [2, 16, 8], strides = [1, 1, 1]} : vector<2x16x96xbf16> to vector<2x16x8xbf16>
    %25 = vector.extract_strided_slice %13 {offsets = [0, 0, 72], sizes = [2, 16, 8], strides = [1, 1, 1]} : vector<2x16x96xbf16> to vector<2x16x8xbf16>
    %26 = vector.extract_strided_slice %13 {offsets = [0, 0, 80], sizes = [2, 16, 8], strides = [1, 1, 1]} : vector<2x16x96xbf16> to vector<2x16x8xbf16>
    %27 = vector.extract_strided_slice %13 {offsets = [0, 0, 88], sizes = [2, 16, 8], strides = [1, 1, 1]} : vector<2x16x96xbf16> to vector<2x16x8xbf16>
    %28 = tpu.concatenate %24, %25, %26, %27 in 0 : vector<2x16x8xbf16>, vector<2x16x8xbf16>, vector<2x16x8xbf16>, vector<2x16x8xbf16> -> vector<8x16x8xbf16>
    "tpu.trace_start"() <{level = 10 : i32, message = "gqd,gkd->gqk"}> : () -> ()
    %cst_8 = arith.constant dense<0.000000e+00> : vector<8x16x16xf32>
    %29 = tpu.matmul %18, %23, %cst_8 {dimension_numbers = #tpu.dot_dimension_numbers<[2], [2], [1], [1], [0, 0, 0, 1, 1, 1], [0], [0]>} : vector<8x16x8xbf16>, vector<8x16x8xbf16>, vector<8x16x16xf32> -> vector<8x16x16xf32>
    "tpu.trace_stop"() : () -> ()
    %cst_9 = arith.constant dense<0xFF800000> : vector<8x16xf32>
    %30 = vector.multi_reduction <maximumf>, %29, %cst_9 [2] : vector<8x16x16xf32> to vector<8x16xf32>
    %31 = vector.shape_cast %30 : vector<8x16xf32> to vector<8x16x1xf32>
    %32 = vector.broadcast %31 : vector<8x16x1xf32> to vector<8x16x16xf32>
    %33 = arith.subf %29, %32 : vector<8x16x16xf32>
    %34 = math.exp %33 : vector<8x16x16xf32>
    %cst_10 = arith.constant dense<0.000000e+00> : vector<8x16xf32>
    %35 = vector.multi_reduction <add>, %34, %cst_10 [2] : vector<8x16x16xf32> to vector<8x16xf32>
    %36 = vector.shape_cast %35 : vector<8x16xf32> to vector<8x16x1xf32>
    %37 = tpu.reciprocal %36 {approx = true} : vector<8x16x1xf32> -> vector<8x16x1xf32>
    %38 = vector.broadcast %37 : vector<8x16x1xf32> to vector<8x16x16xf32>
    %39 = arith.mulf %34, %38 : vector<8x16x16xf32>
    %40 = arith.truncf %39 : vector<8x16x16xf32> to vector<8x16x16xbf16>
    "tpu.trace_start"() <{level = 10 : i32, message = "gqk,gkd->gqd"}> : () -> ()
    %cst_11 = arith.constant dense<0.000000e+00> : vector<8x16x8xf32>
    %41 = tpu.matmul %40, %28, %cst_11 {dimension_numbers = #tpu.dot_dimension_numbers<[2], [1], [1], [2], [0, 0, 0, 1, 1, 2], [0], [0]>} : vector<8x16x16xbf16>, vector<8x16x8xbf16>, vector<8x16x8xf32> -> vector<8x16x8xf32>
    "tpu.trace_stop"() : () -> ()
    %42 = vector.extract_strided_slice %41 {offsets = [0, 0, 0], sizes = [2, 16, 8], strides = [1, 1, 1]} : vector<8x16x8xf32> to vector<2x16x8xf32>
    %43 = vector.extract_strided_slice %41 {offsets = [2, 0, 0], sizes = [2, 16, 8], strides = [1, 1, 1]} : vector<8x16x8xf32> to vector<2x16x8xf32>
    %44 = vector.extract_strided_slice %41 {offsets = [4, 0, 0], sizes = [2, 16, 8], strides = [1, 1, 1]} : vector<8x16x8xf32> to vector<2x16x8xf32>
    %45 = vector.extract_strided_slice %41 {offsets = [6, 0, 0], sizes = [2, 16, 8], strides = [1, 1, 1]} : vector<8x16x8xf32> to vector<2x16x8xf32>
    %46 = tpu.concatenate %42, %43, %44, %45 in 2 : vector<2x16x8xf32>, vector<2x16x8xf32>, vector<2x16x8xf32>, vector<2x16x8xf32> -> vector<2x16x32xf32>
    %47 = vector.shape_cast %46 : vector<2x16x32xf32> to vector<32x32xf32>
    %48 = arith.truncf %47 : vector<32x32xf32> to vector<32x32xbf16>
    %c0_12 = arith.constant 0 : index
    %c0_13 = arith.constant 0 : index
    %c0_14 = arith.constant 0 : index
    %49 = vector.load %arg6[%c0_12, %c0_13, %c0_14] : memref<1x32x32xbf16, #tpu.memory_space<vmem>>, vector<1x32x32xbf16>
    %50 = vector.shape_cast %49 : vector<1x32x32xbf16> to vector<32x32xbf16>
    %cst_15 = arith.constant dense<0.000000e+00> : vector<32x32xf32>
    %51 = tpu.matmul %48, %50, %cst_15 {dimension_numbers = #tpu.dot_dimension_numbers<[1], [0], [0], [1], [0, 0, 1, 1], [], []>} : vector<32x32xbf16>, vector<32x32xbf16>, vector<32x32xf32> -> vector<32x32xf32>
    %c0_16 = arith.constant 0 : index
    %c0_17 = arith.constant 0 : index
    %c0_18 = arith.constant 0 : index
    %52 = vector.load %arg7[%c0_16, %c0_17, %c0_18] : memref<1x1x32xf32, #tpu.memory_space<vmem>>, vector<1x1x32xf32>
    %53 = vector.shape_cast %52 : vector<1x1x32xf32> to vector<1x32xf32>
    %54 = vector.broadcast %53 : vector<1x32xf32> to vector<32x32xf32>
    %55 = arith.addf %51, %54 : vector<32x32xf32>
    %56 = arith.addf %3, %55 : vector<32x32xf32>
    %c0_19 = arith.constant 0 : index
    %c0_20 = arith.constant 0 : index
    %c0_21 = arith.constant 0 : index
    %57 = vector.load %arg12[%c0_19, %c0_20, %c0_21] : memref<1x1x32xf32, #tpu.memory_space<vmem>>, vector<1x1x32xf32>
    %58 = vector.shape_cast %57 : vector<1x1x32xf32> to vector<1x32xf32>
    %c0_22 = arith.constant 0 : index
    %c0_23 = arith.constant 0 : index
    %c0_24 = arith.constant 0 : index
    %59 = vector.load %arg13[%c0_22, %c0_23, %c0_24] : memref<1x1x32xf32, #tpu.memory_space<vmem>>, vector<1x1x32xf32>
    %60 = vector.shape_cast %59 : vector<1x1x32xf32> to vector<1x32xf32>
    %cst_25 = arith.constant dense<0.000000e+00> : vector<32xf32>
    %61 = vector.multi_reduction <add>, %56, %cst_25 [1] : vector<32x32xf32> to vector<32xf32>
    %62 = vector.shape_cast %61 : vector<32xf32> to vector<32x1xf32>
    %cst_26 = arith.constant 3.200000e+01 : f32
    %63 = vector.broadcast %cst_26 : f32 to vector<32x1xf32>
    %64 = arith.divf %62, %63 : vector<32x1xf32>
    %65 = vector.broadcast %64 : vector<32x1xf32> to vector<32x32xf32>
    %66 = arith.subf %56, %65 : vector<32x32xf32>
    %67 = arith.mulf %66, %66 : vector<32x32xf32>
    %cst_27 = arith.constant dense<0.000000e+00> : vector<32xf32>
    %68 = vector.multi_reduction <add>, %67, %cst_27 [1] : vector<32x32xf32> to vector<32xf32>
    %69 = vector.shape_cast %68 : vector<32xf32> to vector<32x1xf32>
    %cst_28 = arith.constant 3.200000e+01 : f32
    %70 = vector.broadcast %cst_28 : f32 to vector<32x1xf32>
    %71 = arith.divf %69, %70 : vector<32x1xf32>
    %72 = vector.broadcast %64 : vector<32x1xf32> to vector<32x32xf32>
    %73 = arith.subf %56, %72 : vector<32x32xf32>
    %cst_29 = arith.constant 9.99999974E-6 : f32
    %74 = vector.broadcast %cst_29 : f32 to vector<32x1xf32>
    %75 = arith.addf %71, %74 : vector<32x1xf32>
    %76 = math.rsqrt %75 : vector<32x1xf32>
    %77 = vector.broadcast %76 : vector<32x1xf32> to vector<32x32xf32>
    %78 = arith.mulf %73, %77 : vector<32x32xf32>
    %79 = vector.broadcast %58 : vector<1x32xf32> to vector<32x32xf32>
    %80 = arith.mulf %78, %79 : vector<32x32xf32>
    %81 = vector.broadcast %60 : vector<1x32xf32> to vector<32x32xf32>
    %82 = arith.addf %80, %81 : vector<32x32xf32>
    %83 = arith.truncf %82 : vector<32x32xf32> to vector<32x32xbf16>
    %cst_30 = arith.constant 0.000000e+00 : f32
    %84 = vector.broadcast %cst_30 : f32 to vector<32x32xf32>
    %c0_31 = arith.constant 0 : index
    %c0_32 = arith.constant 0 : index
    %c0_33 = arith.constant 0 : index
    %85 = vector.load %arg8[%c0_31, %c0_32, %c0_33] : memref<1x32x1024xbf16, #tpu.memory_space<vmem>>, vector<1x32x256xbf16>
    %86 = vector.shape_cast %85 : vector<1x32x256xbf16> to vector<32x256xbf16>
    %cst_34 = arith.constant dense<0.000000e+00> : vector<32x256xf32>
    %87 = tpu.matmul %83, %86, %cst_34 {dimension_numbers = #tpu.dot_dimension_numbers<[1], [0], [0], [1], [0, 0, 1, 1], [], []>} : vector<32x32xbf16>, vector<32x256xbf16>, vector<32x256xf32> -> vector<32x256xf32>
    %c0_35 = arith.constant 0 : index
    %c0_36 = arith.constant 0 : index
    %c0_37 = arith.constant 0 : index
    %88 = vector.load %arg9[%c0_35, %c0_36, %c0_37] : memref<1x1x1024xf32, #tpu.memory_space<vmem>>, vector<1x1x256xf32>
    %89 = vector.shape_cast %88 : vector<1x1x256xf32> to vector<1x256xf32>
    %90 = vector.broadcast %89 : vector<1x256xf32> to vector<32x256xf32>
    %91 = arith.addf %87, %90 : vector<32x256xf32>
    %cst_38 = arith.constant 0.000000e+00 : f32
    %92 = vector.broadcast %cst_38 : f32 to vector<32x256xf32>
    %93 = arith.maximumf %91, %92 : vector<32x256xf32>
    %94 = arith.truncf %93 : vector<32x256xf32> to vector<32x256xbf16>
    %c0_39 = arith.constant 0 : index
    %c0_40 = arith.constant 0 : index
    %c0_41 = arith.constant 0 : index
    %95 = vector.load %arg10[%c0_39, %c0_40, %c0_41] : memref<1x1024x32xbf16, #tpu.memory_space<vmem>>, vector<1x256x32xbf16>
    %96 = vector.shape_cast %95 : vector<1x256x32xbf16> to vector<256x32xbf16>
    %cst_42 = arith.constant dense<0.000000e+00> : vector<32x32xf32>
    %97 = tpu.matmul %94, %96, %cst_42 {dimension_numbers = #tpu.dot_dimension_numbers<[1], [0], [0], [1], [0, 0, 1, 1], [], []>} : vector<32x256xbf16>, vector<256x32xbf16>, vector<32x32xf32> -> vector<32x32xf32>
    %98 = arith.addf %84, %97 : vector<32x32xf32>
    %c0_43 = arith.constant 0 : index
    %c0_44 = arith.constant 0 : index
    %c256 = arith.constant 256 : index
    %99 = vector.load %arg8[%c0_43, %c0_44, %c256] : memref<1x32x1024xbf16, #tpu.memory_space<vmem>>, vector<1x32x256xbf16>
    %100 = vector.shape_cast %99 : vector<1x32x256xbf16> to vector<32x256xbf16>
    %cst_45 = arith.constant dense<0.000000e+00> : vector<32x256xf32>
    %101 = tpu.matmul %83, %100, %cst_45 {dimension_numbers = #tpu.dot_dimension_numbers<[1], [0], [0], [1], [0, 0, 1, 1], [], []>} : vector<32x32xbf16>, vector<32x256xbf16>, vector<32x256xf32> -> vector<32x256xf32>
    %c0_46 = arith.constant 0 : index
    %c0_47 = arith.constant 0 : index
    %c256_48 = arith.constant 256 : index
    %102 = vector.load %arg9[%c0_46, %c0_47, %c256_48] : memref<1x1x1024xf32, #tpu.memory_space<vmem>>, vector<1x1x256xf32>
    %103 = vector.shape_cast %102 : vector<1x1x256xf32> to vector<1x256xf32>
    %104 = vector.broadcast %103 : vector<1x256xf32> to vector<32x256xf32>
    %105 = arith.addf %101, %104 : vector<32x256xf32>
    %cst_49 = arith.constant 0.000000e+00 : f32
    %106 = vector.broadcast %cst_49 : f32 to vector<32x256xf32>
    %107 = arith.maximumf %105, %106 : vector<32x256xf32>
    %108 = arith.truncf %107 : vector<32x256xf32> to vector<32x256xbf16>
    %c0_50 = arith.constant 0 : index
    %c256_51 = arith.constant 256 : index
    %c0_52 = arith.constant 0 : index
    %109 = vector.load %arg10[%c0_50, %c256_51, %c0_52] : memref<1x1024x32xbf16, #tpu.memory_space<vmem>>, vector<1x256x32xbf16>
    %110 = vector.shape_cast %109 : vector<1x256x32xbf16> to vector<256x32xbf16>
    %cst_53 = arith.constant dense<0.000000e+00> : vector<32x32xf32>
    %111 = tpu.matmul %108, %110, %cst_53 {dimension_numbers = #tpu.dot_dimension_numbers<[1], [0], [0], [1], [0, 0, 1, 1], [], []>} : vector<32x256xbf16>, vector<256x32xbf16>, vector<32x32xf32> -> vector<32x32xf32>
    %112 = arith.addf %98, %111 : vector<32x32xf32>
    %c0_54 = arith.constant 0 : index
    %c0_55 = arith.constant 0 : index
    %c512 = arith.constant 512 : index
    %113 = vector.load %arg8[%c0_54, %c0_55, %c512] : memref<1x32x1024xbf16, #tpu.memory_space<vmem>>, vector<1x32x256xbf16>
    %114 = vector.shape_cast %113 : vector<1x32x256xbf16> to vector<32x256xbf16>
    %cst_56 = arith.constant dense<0.000000e+00> : vector<32x256xf32>
    %115 = tpu.matmul %83, %114, %cst_56 {dimension_numbers = #tpu.dot_dimension_numbers<[1], [0], [0], [1], [0, 0, 1, 1], [], []>} : vector<32x32xbf16>, vector<32x256xbf16>, vector<32x256xf32> -> vector<32x256xf32>
    %c0_57 = arith.constant 0 : index
    %c0_58 = arith.constant 0 : index
    %c512_59 = arith.constant 512 : index
    %116 = vector.load %arg9[%c0_57, %c0_58, %c512_59] : memref<1x1x1024xf32, #tpu.memory_space<vmem>>, vector<1x1x256xf32>
    %117 = vector.shape_cast %116 : vector<1x1x256xf32> to vector<1x256xf32>
    %118 = vector.broadcast %117 : vector<1x256xf32> to vector<32x256xf32>
    %119 = arith.addf %115, %118 : vector<32x256xf32>
    %cst_60 = arith.constant 0.000000e+00 : f32
    %120 = vector.broadcast %cst_60 : f32 to vector<32x256xf32>
    %121 = arith.maximumf %119, %120 : vector<32x256xf32>
    %122 = arith.truncf %121 : vector<32x256xf32> to vector<32x256xbf16>
    %c0_61 = arith.constant 0 : index
    %c512_62 = arith.constant 512 : index
    %c0_63 = arith.constant 0 : index
    %123 = vector.load %arg10[%c0_61, %c512_62, %c0_63] : memref<1x1024x32xbf16, #tpu.memory_space<vmem>>, vector<1x256x32xbf16>
    %124 = vector.shape_cast %123 : vector<1x256x32xbf16> to vector<256x32xbf16>
    %cst_64 = arith.constant dense<0.000000e+00> : vector<32x32xf32>
    %125 = tpu.matmul %122, %124, %cst_64 {dimension_numbers = #tpu.dot_dimension_numbers<[1], [0], [0], [1], [0, 0, 1, 1], [], []>} : vector<32x256xbf16>, vector<256x32xbf16>, vector<32x32xf32> -> vector<32x32xf32>
    %126 = arith.addf %112, %125 : vector<32x32xf32>
    %c0_65 = arith.constant 0 : index
    %c0_66 = arith.constant 0 : index
    %c768 = arith.constant 768 : index
    %127 = vector.load %arg8[%c0_65, %c0_66, %c768] : memref<1x32x1024xbf16, #tpu.memory_space<vmem>>, vector<1x32x256xbf16>
    %128 = vector.shape_cast %127 : vector<1x32x256xbf16> to vector<32x256xbf16>
    %cst_67 = arith.constant dense<0.000000e+00> : vector<32x256xf32>
    %129 = tpu.matmul %83, %128, %cst_67 {dimension_numbers = #tpu.dot_dimension_numbers<[1], [0], [0], [1], [0, 0, 1, 1], [], []>} : vector<32x32xbf16>, vector<32x256xbf16>, vector<32x256xf32> -> vector<32x256xf32>
    %c0_68 = arith.constant 0 : index
    %c0_69 = arith.constant 0 : index
    %c768_70 = arith.constant 768 : index
    %130 = vector.load %arg9[%c0_68, %c0_69, %c768_70] : memref<1x1x1024xf32, #tpu.memory_space<vmem>>, vector<1x1x256xf32>
    %131 = vector.shape_cast %130 : vector<1x1x256xf32> to vector<1x256xf32>
    %132 = vector.broadcast %131 : vector<1x256xf32> to vector<32x256xf32>
    %133 = arith.addf %129, %132 : vector<32x256xf32>
    %cst_71 = arith.constant 0.000000e+00 : f32
    %134 = vector.broadcast %cst_71 : f32 to vector<32x256xf32>
    %135 = arith.maximumf %133, %134 : vector<32x256xf32>
    %136 = arith.truncf %135 : vector<32x256xf32> to vector<32x256xbf16>
    %c0_72 = arith.constant 0 : index
    %c768_73 = arith.constant 768 : index
    %c0_74 = arith.constant 0 : index
    %137 = vector.load %arg10[%c0_72, %c768_73, %c0_74] : memref<1x1024x32xbf16, #tpu.memory_space<vmem>>, vector<1x256x32xbf16>
    %138 = vector.shape_cast %137 : vector<1x256x32xbf16> to vector<256x32xbf16>
    %cst_75 = arith.constant dense<0.000000e+00> : vector<32x32xf32>
    %139 = tpu.matmul %136, %138, %cst_75 {dimension_numbers = #tpu.dot_dimension_numbers<[1], [0], [0], [1], [0, 0, 1, 1], [], []>} : vector<32x256xbf16>, vector<256x32xbf16>, vector<32x32xf32> -> vector<32x32xf32>
    %140 = arith.addf %126, %139 : vector<32x32xf32>
    %c0_76 = arith.constant 0 : index
    %c0_77 = arith.constant 0 : index
    %c0_78 = arith.constant 0 : index
    %141 = vector.load %arg11[%c0_76, %c0_77, %c0_78] : memref<1x1x32xf32, #tpu.memory_space<vmem>>, vector<1x1x32xf32>
    %142 = vector.shape_cast %141 : vector<1x1x32xf32> to vector<1x32xf32>
    %143 = vector.broadcast %142 : vector<1x32xf32> to vector<32x32xf32>
    %144 = arith.addf %140, %143 : vector<32x32xf32>
    %145 = arith.addf %82, %144 : vector<32x32xf32>
    %c0_79 = arith.constant 0 : index
    %c0_80 = arith.constant 0 : index
    %c0_81 = arith.constant 0 : index
    %146 = vector.load %arg14[%c0_79, %c0_80, %c0_81] : memref<1x1x32xf32, #tpu.memory_space<vmem>>, vector<1x1x32xf32>
    %147 = vector.shape_cast %146 : vector<1x1x32xf32> to vector<1x32xf32>
    %c0_82 = arith.constant 0 : index
    %c0_83 = arith.constant 0 : index
    %c0_84 = arith.constant 0 : index
    %148 = vector.load %arg15[%c0_82, %c0_83, %c0_84] : memref<1x1x32xf32, #tpu.memory_space<vmem>>, vector<1x1x32xf32>
    %149 = vector.shape_cast %148 : vector<1x1x32xf32> to vector<1x32xf32>
    %cst_85 = arith.constant dense<0.000000e+00> : vector<32xf32>
    %150 = vector.multi_reduction <add>, %145, %cst_85 [1] : vector<32x32xf32> to vector<32xf32>
    %151 = vector.shape_cast %150 : vector<32xf32> to vector<32x1xf32>
    %cst_86 = arith.constant 3.200000e+01 : f32
    %152 = vector.broadcast %cst_86 : f32 to vector<32x1xf32>
    %153 = arith.divf %151, %152 : vector<32x1xf32>
    %154 = vector.broadcast %153 : vector<32x1xf32> to vector<32x32xf32>
    %155 = arith.subf %145, %154 : vector<32x32xf32>
    %156 = arith.mulf %155, %155 : vector<32x32xf32>
    %cst_87 = arith.constant dense<0.000000e+00> : vector<32xf32>
    %157 = vector.multi_reduction <add>, %156, %cst_87 [1] : vector<32x32xf32> to vector<32xf32>
    %158 = vector.shape_cast %157 : vector<32xf32> to vector<32x1xf32>
    %cst_88 = arith.constant 3.200000e+01 : f32
    %159 = vector.broadcast %cst_88 : f32 to vector<32x1xf32>
    %160 = arith.divf %158, %159 : vector<32x1xf32>
    %161 = vector.broadcast %153 : vector<32x1xf32> to vector<32x32xf32>
    %162 = arith.subf %145, %161 : vector<32x32xf32>
    %cst_89 = arith.constant 9.99999974E-6 : f32
    %163 = vector.broadcast %cst_89 : f32 to vector<32x1xf32>
    %164 = arith.addf %160, %163 : vector<32x1xf32>
    %165 = math.rsqrt %164 : vector<32x1xf32>
    %166 = vector.broadcast %165 : vector<32x1xf32> to vector<32x32xf32>
    %167 = arith.mulf %162, %166 : vector<32x32xf32>
    %168 = vector.broadcast %147 : vector<1x32xf32> to vector<32x32xf32>
    %169 = arith.mulf %167, %168 : vector<32x32xf32>
    %170 = vector.broadcast %149 : vector<1x32xf32> to vector<32x32xf32>
    %171 = arith.addf %169, %170 : vector<32x32xf32>
    %c0_90 = arith.constant 0 : index
    %c0_91 = arith.constant 0 : index
    %172 = vector.load %arg17[%c0_90, %c0_91] : memref<32x32xf32, #tpu.memory_space<vmem>>, vector<32x32xf32>
    tpu.vector_store %arg17[%c0_90, %c0_91], %171 {strides = array<i32>} : memref<32x32xf32, #tpu.memory_space<vmem>>, vector<32x32xf32>,
    %c3_i32 = arith.constant 3 : i32
    %173 = arith.cmpi eq, %arg0, %c3_i32 : i32
    %174 = arith.extui %173 : i1 to i32
    %c0_i32_92 = arith.constant 0 : i32
    %175 = arith.cmpi ne, %174, %c0_i32_92 : i32
    scf.if %175 {
      %c0_93 = arith.constant 0 : index
      %c0_94 = arith.constant 0 : index
      %176 = vector.load %arg16[%c0_93, %c0_94] : memref<32x32xf32, #tpu.memory_space<vmem>>, vector<32x32xf32>
      tpu.vector_store %arg16[%c0_93, %c0_94], %171 {strides = array<i32>} : memref<32x32xf32, #tpu.memory_space<vmem>>, vector<32x32xf32>,
    } else {
    }
    return
  }
  func.func @transform_0(%arg0: i32) -> (i32, i32) {
    %c0_i32 = arith.constant 0 : i32
    %c0_i32_0 = arith.constant 0 : i32
    %c0_i32_1 = arith.constant 0 : i32
    return %c0_i32, %c0_i32_0 : i32, i32
  }
  func.func @transform_1(%arg0: i32) -> (i32, i32) {
    %c0_i32 = arith.constant 0 : i32
    %c0_i32_0 = arith.constant 0 : i32
    %c0_i32_1 = arith.constant 0 : i32
    return %c0_i32, %c0_i32_0 : i32, i32
  }
  func.func @transform_2(%arg0: i32) -> (i32, i32) {
    %c0_i32 = arith.constant 0 : i32
    %c0_i32_0 = arith.constant 0 : i32
    %c0_i32_1 = arith.constant 0 : i32
    return %c0_i32, %c0_i32_0 : i32, i32
  }
  func.func @transform_3(%arg0: i32) -> (i32, i32, i32) {
    %c0_i32 = arith.constant 0 : i32
    %c0_i32_0 = arith.constant 0 : i32
    %c0_i32_1 = arith.constant 0 : i32
    return %arg0, %c0_i32, %c0_i32_0 : i32, i32, i32
  }
  func.func @transform_4(%arg0: i32) -> (i32, i32, i32) {
    %c0_i32 = arith.constant 0 : i32
    %c0_i32_0 = arith.constant 0 : i32
    %c0_i32_1 = arith.constant 0 : i32
    return %arg0, %c0_i32, %c0_i32_0 : i32, i32, i32
  }
  func.func @transform_5(%arg0: i32) -> (i32, i32, i32) {
    %c0_i32 = arith.constant 0 : i32
    %c0_i32_0 = arith.constant 0 : i32
    %c0_i32_1 = arith.constant 0 : i32
    return %arg0, %c0_i32, %c0_i32_0 : i32, i32, i32
  }
  func.func @transform_6(%arg0: i32) -> (i32, i32, i32) {
    %c0_i32 = arith.constant 0 : i32
    %c0_i32_0 = arith.constant 0 : i32
    %c0_i32_1 = arith.constant 0 : i32
    return %arg0, %c0_i32, %c0_i32_0 : i32, i32, i32
  }
  func.func @transform_7(%arg0: i32) -> (i32, i32, i32) {
    %c0_i32 = arith.constant 0 : i32
    %c0_i32_0 = arith.constant 0 : i32
    %c0_i32_1 = arith.constant 0 : i32
    return %arg0, %c0_i32, %c0_i32_0 : i32, i32, i32
  }
  func.func @transform_8(%arg0: i32) -> (i32, i32, i32) {
    %c0_i32 = arith.constant 0 : i32
    %c0_i32_0 = arith.constant 0 : i32
    %c0_i32_1 = arith.constant 0 : i32
    return %arg0, %c0_i32, %c0_i32_0 : i32, i32, i32
  }
  func.func @transform_9(%arg0: i32) -> (i32, i32, i32) {
    %c0_i32 = arith.constant 0 : i32
    %c0_i32_0 = arith.constant 0 : i32
    %c0_i32_1 = arith.constant 0 : i32
    return %arg0, %c0_i32, %c0_i32_0 : i32, i32, i32
  }
  func.func @transform_10(%arg0: i32) -> (i32, i32, i32) {
    %c0_i32 = arith.constant 0 : i32
    %c0_i32_0 = arith.constant 0 : i32
    %c0_i32_1 = arith.constant 0 : i32
    return %arg0, %c0_i32, %c0_i32_0 : i32, i32, i32
  }
  func.func @transform_11(%arg0: i32) -> (i32, i32, i32) {
    %c0_i32 = arith.constant 0 : i32
    %c0_i32_0 = arith.constant 0 : i32
    %c0_i32_1 = arith.constant 0 : i32
    return %arg0, %c0_i32, %c0_i32_0 : i32, i32, i32
  }
  func.func @transform_12(%arg0: i32) -> (i32, i32, i32) {
    %c0_i32 = arith.constant 0 : i32
    %c0_i32_0 = arith.constant 0 : i32
    %c0_i32_1 = arith.constant 0 : i32
    return %arg0, %c0_i32, %c0_i32_0 : i32, i32, i32
  }
  func.func @transform_13(%arg0: i32) -> (i32, i32, i32) {
    %c0_i32 = arith.constant 0 : i32
    %c0_i32_0 = arith.constant 0 : i32
    %c0_i32_1 = arith.constant 0 : i32
    return %arg0, %c0_i32, %c0_i32_0 : i32, i32, i32
  }
  func.func @transform_14(%arg0: i32) -> (i32, i32, i32) {
    %c0_i32 = arith.constant 0 : i32
    %c0_i32_0 = arith.constant 0 : i32
    %c0_i32_1 = arith.constant 0 : i32
    return %arg0, %c0_i32, %c0_i32_0 : i32, i32, i32
  }
  func.func @transform_15(%arg0: i32) -> (i32, i32) {
    %c0_i32 = arith.constant 0 : i32
    %c0_i32_0 = arith.constant 0 : i32
    %c0_i32_1 = arith.constant 0 : i32
    return %c0_i32, %c0_i32_0 : i32, i32
  }
}

</mosaic_0001>

<bundles_post_ra>
// kernel: patch_encoder_forward.1
= control target key start
LH: loop header
LB: loop body
LE: loop exit
PB: predicated region body
PF: predicated region fallthrough
CT: control target
= control target key end

     0   :  { %s4138_s18 = smov 0   ;;  %s4824_s0 = inlined_call_operand.vmem [shape: f32[32,64], index: 0, kind: input, shape index: {}]   ;;  %s4825_s1 = inlined_call_operand.vmem [shape: bf16[64,32], index: 1, kind: input, shape index: {}]   ;;  %s4826_s2 = inlined_call_operand.vmem [shape: f32[32,32], index: 2, kind: input, shape index: {}]   ;;  %s4827_s3 = inlined_call_operand.vmem [shape: bf16[4,32,96], index: 3, kind: input, shape index: {}]   ;;  %s4828_s4 = inlined_call_operand.vmem [shape: f32[4,1,96], index: 4, kind: input, shape index: {}]   ;;  %s4829_s5 = inlined_call_operand.vmem [shape: bf16[4,32,32], index: 5, kind: input, shape index: {}]   ;;  %s4830_s6 = inlined_call_operand.vmem [shape: f32[4,1,32], index: 6, kind: input, shape index: {}]   ;;  %s4831_s7 = inlined_call_operand.vmem [shape: bf16[4,32,1024], index: 7, kind: input, shape index: {}]   ;;  %s4832_s8 = inlined_call_operand.vmem [shape: f32[4,1,1024], index: 8, kind: input, shape index: {}]   ;;  %s4833_s9 = inlined_call_operand.vmem [shape: bf16[4,1024,32], index: 9, kind: input, shape index: {}]   ;;  %s4834_s10 = inlined_call_operand.vmem [shape: f32[4,1,32], index: 10, kind: input, shape index: {}]   ;;  %s4835_s11 = inlined_call_operand.vmem [shape: f32[4,1,32], index: 11, kind: input, shape index: {}]   ;;  %s4836_s12 = inlined_call_operand.vmem [shape: f32[4,1,32], index: 12, kind: input, shape index: {}]   ;;  %s4837_s13 = inlined_call_operand.vmem [shape: f32[4,1,32], index: 13, kind: input, shape index: {}]   ;;  %s4838_s14 = inlined_call_operand.vmem [shape: f32[4,1,32], index: 14, kind: input, shape index: {}]   ;;  %s4839_s15 = inlined_call_operand.vmem [shape: f32[32,32], index: 15, kind: output, shape index: {}]  }
   0x1   :  { %4845 = sst [smem:[#allocation5_spill]] %s4824_s0 }
   0x2   :  { %4846 = sst [smem:[#allocation6_spill]] %s4826_s2 }
   0x3   :  { %4847 = sst [smem:[#allocation7_spill]] %s4827_s3 }
   0x4   :  { %4848 = sst [smem:[#allocation8_spill]] %s4829_s5 }
   0x5   :  { %4849 = sst [smem:[#allocation9_spill]] %s4831_s7 }
   0x6   :  { %4850 = sst [smem:[#allocation10_spill]] %s4832_s8 }
   0x7   :  { %4851 = sst [smem:[#allocation11_spill]] %s4839_s15 }
   0x8 LB: > { %4852 = sst [smem:[#allocation3_spill]] %s4045_s18  ;;  %s4144_s19 = sadd.s32 4294967295, %s4045_s18   ;;  %s4045_s18 = sphi %s4138_s18, %s25_s18  }
   0x9   : > { %p3409_p0 = scmp.ge.s32.totalorder %s4045_s18, 1  ;;  %p527_p1 = scmp.lt.s32.totalorder %s4045_s18, 5 }
   0xb   : > { %p528_p2 = pnand %p3409_p0, %p527_p1 }
   0xd   : > { %531 = sbr.rel (%p528_p2) target bundleno = 3028 (0xbd4), region = 80 }
  0x12   : > { %p610_p3 = scmp.lt.s32.totalorder %s4144_s19, 3  ;;  %s4853_s3 = sld [smem:[#allocation7_spill]] }
  0x13   : > { %s4854_s5 = sld [smem:[#allocation8_spill]]  ;;  %p3419_p4 = scmp.ne.s32.totalorder %s4144_s19, 0 }
  0x14   : > { %s4150_s20 = scalar_select %p610_p3, %s4144_s19, 3 }
  0x15   : > { %s4855_s7 = sld [smem:[#allocation9_spill]] }
  0x16   : > { %s3548_s21 = sshll.u32 %s4150_s20, 4  ;;  %s3550_s15 = sshll.u32 %s4150_s20, 7 }
  0x17   : > { %s3416_s23 = sshll.u32 %s4150_s20, 3  ;;  %s4856_s8 = sld [smem:[#allocation10_spill]] }
  0x18   : > { %s4160_s27 = scalar_lea.vmem %s4853_s3, %s3548_s21  ;;  %s3551_s3 = sshll.u32 %s4150_s20, 9 }
  0x19   : > { %s4165_s30 = scalar_lea.vmem %s4854_s5, %s3548_s21  ;;  %s4187_s29 = scalar_lea.vmem %s4833_s9, %s3551_s3 }
  0x1a   : > { %s642_s18 = scalar_lea.vmem %s4834_s10, %s4150_s20  ;;  %s645_s2 = scalar_lea.vmem %s4835_s11, %s4150_s20 }
  0x1b   : > { %s4175_s22 = scalar_lea.vmem %s4855_s7, %s3550_s15  ;;  %s648_s24 = scalar_lea.vmem %s4836_s12, %s4150_s20 }
  0x1c   : > { %s654_s3 = scalar_lea.vmem %s4838_s14, %s4150_s20  ;;  %659 = sbr.rel (%p3419_p4) target bundleno = 252 (0xfc), region = 84 }
  0x1d   : > { %s4181_s26 = scalar_lea.vmem %s4856_s8, %s3416_s23  ;;  %s651_s8 = scalar_lea.vmem %s4837_s13, %s4150_s20 }
  0x1e   : > { %4857 = sst [smem:[#allocation4_spill]] %s4181_s26 }
  0x1f   : > { %s4858_s23 = sld [smem:[#allocation5_spill]] (!%p3419_p4) }
  0x20   : > { %s4859_s25 = sld [smem:[#allocation6_spill]] (!%p3419_p4) }
  0x21   : > { %v3853_v0 = vld [vmem:[%s4825_s1 + $0x18] sm:$0xff]   ;;  %v3854_v1 = vld [vmem:[%s4825_s1 + $0x10] sm:$0xff]   ;;  %v3855_v2 = vld [vmem:[%s4825_s1 + $0x8] sm:$0xff]   ;;  %vm702_vm0 = vcmask 523264   ;;  %vm758_vm1 = vcmask 261120  }
  0x22   : > { %3710 = vmatprep.subr.bf16.mxu0 %v3853_v0  ;;  %v3856_v6 = vld [vmem:[%s4825_s1] sm:$0xff]  }
  0x23   : > { %3711 = vmatpush3.bf16.msra.mxu0 %v3853_v0 }
  0x24   : > { %3712 = vmatprep.subr.bf16.mxu0 %v3854_v1 }
  0x25   : > { %v660_v3 = vld [vmem:[%s4858_s23] sm:$0xff]  ;;  %v661_v4 = vld [vmem:[%s4858_s23 + $0x8] sm:$0xff]  ;;  %v662_v7 = vld [vmem:[%s4858_s23 + $0x10] sm:$0xff] }
  0x26   : > { %v664_v5 = vpack.c.bf16 %v661_v4, %v660_v3  ;;  %v663_v8 = vld [vmem:[%s4858_s23 + $0x18] sm:$0xff]  ;;  %v676_v10 = vld [vmem:[%s4859_s25 + $0x10] sm:$0xff]  ;;  %v674_v12 = vld [vmem:[%s4859_s25] sm:$0xff] }
  0x27   : > { %3713 = vmatpush3.bf16.msra.mxu0 %v3854_v1  ;;  %v665_v9 = vpack.c.bf16 %v663_v8, %v662_v7  ;;  %v677_v15 = vld [vmem:[%s4859_s25 + $0x18] sm:$0xff]  ;;  %v675_v18 = vld [vmem:[%s4859_s25 + $0x8] sm:$0xff] }
  0x28   : > { %3718 = vmatprep.mubr.msk.bf16.mxu0 %vm702_vm0, %v664_v5  ;;  %3714 = vmatprep.subr.bf16.mxu0 %v3855_v2 }
  0x2b   : > { %3715 = vmatpush3.bf16.msra.mxu0 %v3855_v2 }
  0x2c   : > { %3716 = vmatprep.subr.bf16.mxu0 %v3856_v6 }
  0x2f   : > { %3717 = vmatpush3.bf16.msra.mxu0 %v3856_v6 }
  0x32   : > { %3719 = vmatmul.mubr.msk.bf16.vlgmr.msra.gmra.mxu0 %vm702_vm0, %v665_v9 }
  0xf2   : > { %v3720_v11 = vpop.f32.mrf.mxu0 }
  0xf3   : > { %v752_v13 = vadd.f32 %v3720_v11, %v676_v10 }
  0xf4   : > { %v743_v14 = vpop.f32.mrf.mxu0 }
  0xf5   : > { %761 = vst.msk [vmem:[#allocation2 + $0x10] sm:$0xff] %vm758_vm1, %v752_v13  ;;  %v744_v16 = vadd.f32 %v743_v14, %v674_v12 }
  0xf6   : > { %v3721_v17 = vpop.f32.mrf.mxu0 }
  0xf7   : > { %759 = vst.msk [vmem:[#allocation2] sm:$0xff] %vm758_vm1, %v744_v16  ;;  %v755_v19 = vadd.f32 %v3721_v17, %v677_v15 }
  0xf8   : > { %v746_v20 = vpop.f32.mrf.mxu0 }
  0xf9   : > { %762 = vst.msk [vmem:[#allocation2 + $0x18] sm:$0xff] %vm758_vm1, %v755_v19  ;;  %v747_v21 = vadd.f32 %v746_v20, %v675_v18 }
  0xfb   : > { %760 = vst.msk [vmem:[#allocation2 + $0x8] sm:$0xff] %vm758_vm1, %v747_v21 }
  0xfc PF: > { %v3887_v22 = vld [vmem:[%s4160_s27 + $0x8] sm:$0xff]   ;;  %v3888_v23 = vld [vmem:[%s4160_s27] sm:$0xff]   ;;  %vm792_vm2 = vcmask 261120   ;;  %v765_v26 = vld [vmem:[#allocation2 + $0x10] sm:$0xff]  ;;  %s4860_s26 = scalar_lea.vmem %s4828_s4, %s4150_s20  ;;  %v4047_v39 = vmov 0.0   ;;  %s4048_s15 = smov 112  }
  0xfd   : > { %3722 = vmatprep.subr.bf16.mxu0 %v3887_v22  ;;  %v3426_v33 = vld [vmem:[%s4860_s26] ss:$0 sm:$0xff]  ;;  %3730 = vmatprep.subr.bf16.mxu1 %v4047_v39  ;;  %s4049_s28 = smov 120   ;;  %vm4050_vm3 = vmmov 0   ;;  %s4051_s21 = smov 104   ;;  %vm866_vm4 = vcmask 64512  }
  0xfe   : > { %v763_v24 = vld [vmem:[#allocation2] sm:$0xff]  ;;  %3723 = vmatpush3.bf16.msra.mxu0 %v3887_v22  ;;  %3732 = vmatprep.mubr.msk.bf16.mxu1 %vm4050_vm3, %v4047_v39  ;;  %s4052_s16 = smov 96   ;;  %s4053_s5 = smov 64   ;;  %vm1257_vm5 = vcmask 130048   ;;  %vm1874_vm6 = vcmask 195584  }
  0xff   : > { %3724 = vmatprep.subr.bf16.mxu0 %v3888_v23  ;;  %s4054_s17 = smov 8   ;;  %s4055_s7 = smov 16  }
 0x100   : > { %v766_v28 = vld [vmem:[#allocation2 + $0x18] sm:$0xff]  ;;  %s4056_s27 = smov 24   ;;  %s4861_s26 = scalar_lea.vmem %s4830_s6, %s4150_s20 }
 0x101   : > { %v768_v29 = vpack.c.bf16 %v766_v28, %v765_v26  ;;  %p3545_p5 = scmp.ne.s32.totalorder %s4144_s19, 3 }
 0x102   : > { %v764_v25 = vld [vmem:[#allocation2 + $0x8] sm:$0xff]  ;;  %3725 = vmatpush3.bf16.msra.mxu0 %v3888_v23 }
 0x103   : > { %v767_v27 = vpack.c.bf16 %v764_v25, %v763_v24  ;;  %3736 = vmatprep.subr.bf16.mxu0 %v4047_v39 }
 0x105   : > { %3726 = vmatprep.mubr.msk.bf16.mxu0 %vm792_vm2, %v767_v27 }
 0x106   : > { %3727 = vmatmul.mubr.msk.bf16.vlgmr.msra.gmra.mxu0 %vm792_vm2, %v768_v29 }
 0x107   : > { %3738 = vmatprep.mubr.msk.bf16.mxu0 %vm4050_vm3, %v4047_v39 }
 0x1c6   : > { %v3728_v30 = vpop.f32.mrf.mxu0 }
 0x1c7   : > { %v842_v40 = vadd.f32 %v3728_v30, %v3426_v33 }
 0x1c8   : > { %v833_v31 = vpop.f32.mrf.mxu0 }
 0x1c9   : > { %v834_v35 = vadd.f32 %v3426_v33, %v833_v31 }
 0x1ca   : > { %v3729_v32 = vpop.f32.mrf.mxu0 }
 0x1cb   : > { %v845_v37 = vadd.f32 %v3729_v32, %v3426_v33 }
 0x1cc   : > { %v836_v34 = vpop.f32.mrf.mxu0 }
 0x1cd   : > { %v837_v36 = vadd.f32 %v3426_v33, %v836_v34  ;;  %v4257_v41 = vpack.c.bf16 %v845_v37, %v842_v40 }
 0x1cf   : > { %v848_v38 = vpack.c.bf16 %v837_v36, %v834_v35 }
 0x1d1   : > { %856 = vrot.lane.b32.xlu1 %v848_v38, %s4048_s15  ;;  %852 = vrot.lane.b32.xlu0 %v848_v38, %s4049_s28 }
 0x1d5   : > { %858 = vrot.lane.b32.xlu1 %v4257_v41, %s4048_s15  ;;  %854 = vrot.lane.b32.xlu0 %v4257_v41, %s4049_s28 }
 0x1d9   : > { %862 = vrot.lane.b32.xlu1 %v4257_v41, %s4051_s21  ;;  %860 = vrot.lane.b32.xlu0 %v848_v38, %s4051_s21 }
 0x1dd   : > { %914 = vrot.lane.b32.xlu1 %v4257_v41, %s4052_s16  ;;  %864 = vrot.lane.b32.xlu0 %v848_v38, %s4052_s16 }
 0x243   : > { %v4267_v42 = vpop.permute.xlu1 %856  ;;  %v4269_v43 = vpop.permute.xlu0 %852 }
 0x244   : > { %963 = vrot.lane.b32.xlu0 %v4269_v43, %s4052_s16 }
 0x247   : > { %v4272_v44 = vpop.permute.xlu1 %858  ;;  %v4274_v45 = vpop.permute.xlu0 %854 }
 0x248   : > { %1061 = vrot.lane.b32.xlu0 %v4267_v42, %s4052_s16  ;;  %1012 = vrot.lane.b32.xlu1 %v4274_v45, %s4052_s16 }
 0x24b   : > { %v4278_v46 = vpop.permute.xlu1 %862  ;;  %v4280_v47 = vpop.permute.xlu0 %860 }
 0x24c   : > { %1110 = vrot.lane.b32.xlu1 %v4272_v44, %s4052_s16  ;;  %1159 = vrot.lane.b32.xlu0 %v4280_v47, %s4052_s16 }
 0x24f   : > { %v915_v48 = vpop.permute.xlu1 %914  ;;  %v865_v49 = vpop.permute.xlu0 %864 }
 0x250   : > { %v920_v50 = vsel %vm866_vm4, %v915_v48, 0  ;;  %1208 = vrot.lane.b32.xlu1 %v4278_v46, %s4052_s16  ;;  %v871_v51 = vsel %vm866_vm4, %v865_v49, 0 }
 0x251   : > { %3731 = vmatpush3.bf16.xpose.msra.mxu1 %v871_v51  ;;  %3737 = vmatpush3.bf16.xpose.msra.mxu0 %v920_v50 }
 0x252   : > { %3742 = vmatprep.subr.bf16.mxu1 %v4047_v39  ;;  %3748 = vmatprep.subr.bf16.mxu0 %v4047_v39 }
 0x254   : > { %1442 = vrot.lane.b32.xlu1 %v848_v38, %s4053_s5 }
 0x258   : > { %3733 = vmatmul.mubr.msk.bf16.vlgmr.msra.gmra.mxu1 %vm866_vm4, %v848_v38  ;;  %3739 = vmatmul.mubr.msk.bf16.vlgmr.msra.gmra.mxu0 %vm866_vm4, %v4257_v41 }
 0x259   : > { %3744 = vmatprep.mubr.msk.bf16.mxu1 %vm4050_vm3, %v4047_v39  ;;  %3750 = vmatprep.mubr.msk.bf16.mxu0 %vm4050_vm3, %v4047_v39 }
 0x2b6   : > { %v964_v52 = vpop.permute.xlu0 %963 }
 0x2b7   : > { %v969_v53 = vsel %vm866_vm4, %v964_v52, 0 }
 0x2b8   : > { %3743 = vmatpush3.bf16.xpose.msra.mxu1 %v969_v53 }
 0x2b9   : > { %3754 = vmatprep.subr.bf16.mxu1 %v4047_v39 }
 0x2ba   : > { %v1013_v54 = vpop.permute.xlu1 %1012  ;;  %v1062_v56 = vpop.permute.xlu0 %1061 }
 0x2bb   : > { %v1018_v55 = vsel %vm866_vm4, %v1013_v54, 0  ;;  %v1067_v57 = vsel %vm866_vm4, %v1062_v56, 0 }
 0x2bc   : > { %3749 = vmatpush3.bf16.xpose.msra.mxu0 %v1018_v55 }
 0x2bd   : > { %3760 = vmatprep.subr.bf16.mxu0 %v4047_v39 }
 0x2be   : > { %v1111_v58 = vpop.permute.xlu1 %1110  ;;  %v1160_v60 = vpop.permute.xlu0 %1159 }
 0x2bf   : > { %3745 = vmatmul.mubr.msk.bf16.vlgmr.msra.gmra.mxu1 %vm866_vm4, %v4269_v43  ;;  %v1116_v59 = vsel %vm866_vm4, %v1111_v58, 0  ;;  %v1165_v61 = vsel %vm866_vm4, %v1160_v60, 0 }
 0x2c0   : > { %3755 = vmatpush3.bf16.xpose.msra.mxu1 %v1067_v57  ;;  %3756 = vmatprep.mubr.msk.bf16.mxu1 %vm4050_vm3, %v4047_v39 }
 0x2c1   : > { %3766 = vmatprep.subr.bf16.mxu1 %v4047_v39 }
 0x2c2   : > { %v1209_v62 = vpop.permute.xlu1 %1208 }
 0x2c3   : > { %3751 = vmatmul.mubr.msk.bf16.vlgmr.msra.gmra.mxu0 %vm866_vm4, %v4274_v45  ;;  %v1214_v63 = vsel %vm866_vm4, %v1209_v62, 0 }
 0x2c4   : > { %3761 = vmatpush3.bf16.xpose.msra.mxu0 %v1116_v59  ;;  %3762 = vmatprep.mubr.msk.bf16.mxu0 %vm4050_vm3, %v4047_v39 }
 0x2c5   : > { %3772 = vmatprep.subr.bf16.mxu0 %v4047_v39 }
 0x2c6   : > { %v1443_v0 = vpop.permute.xlu1 %1442 }
 0x2c7   : > { %3757 = vmatmul.mubr.msk.bf16.vlgmr.msra.gmra.mxu1 %vm866_vm4, %v4267_v42 }
 0x2c8   : > { %3767 = vmatpush3.bf16.xpose.msra.mxu1 %v1165_v61  ;;  %3768 = vmatprep.mubr.msk.bf16.mxu1 %vm4050_vm3, %v4047_v39 }
 0x2c9   : > { %3778 = vmatprep.subr.bf16.mxu1 %v4047_v39 }
 0x2cb   : > { %3763 = vmatmul.mubr.msk.bf16.vlgmr.msra.gmra.mxu0 %vm866_vm4, %v4272_v44 }
 0x2cc   : > { %3773 = vmatpush3.bf16.xpose.msra.mxu0 %v1214_v63  ;;  %3774 = vmatprep.mubr.msk.bf16.mxu0 %vm4050_vm3, %v4047_v39 }
 0x2cd   : > { %3784 = vmatprep.subr.bf16.mxu0 %v4047_v39 }
 0x2cf   : > { %3769 = vmatmul.mubr.msk.bf16.vlgmr.msra.gmra.mxu1 %vm866_vm4, %v4280_v47 }
 0x2d0   : > { %3779 = vmatpush3.bf16.msra.mxu1 %v1443_v0  ;;  %3780 = vmatprep.mubr.msk.bf16.mxu1 %vm4050_vm3, %v4047_v39 }
 0x2d1   : > { %3790 = vmatprep.subr.bf16.mxu1 %v4047_v39 }
 0x2d3   : > { %3775 = vmatmul.mubr.msk.bf16.vlgmr.msra.gmra.mxu0 %vm866_vm4, %v4278_v46 }
 0x2d4   : > { %3786 = vmatprep.mubr.msk.bf16.mxu0 %vm4050_vm3, %v4047_v39 }
 0x318   : > { %v4334_v1 = vpop.f32.mrf.mxu1  ;;  %v4336_v2 = vpop.f32.mrf.mxu0 }
 0x319   : > { %v1264_v3 = vsel %vm1257_vm5, %v4336_v2, -inf  ;;  %v1258_v8 = vsel %vm1257_vm5, %v4334_v1, -inf }
 0x31a   : > { %v3740_v4 = vpop.f32.mrf.mxu0  ;;  %1265 = vmax.xlane.f32.xlu0 %v1264_v3  ;;  %v3734_v5 = vpop.f32.mrf.mxu1 }
 0x31c   : > { %v4340_v6 = vpop.f32.mrf.mxu1  ;;  %v4342_v7 = vpop.f32.mrf.mxu0 }
 0x31d   : > { %v1261_v9 = vsel %vm1257_vm5, %v4340_v6, -inf  ;;  %v1267_v12 = vsel %vm1257_vm5, %v4342_v7, -inf }
 0x31e   : > { %v3741_v10 = vpop.f32.mrf.mxu0  ;;  %1259 = vmax.xlane.f32.xlu0 %v1258_v8  ;;  %1262 = vmax.xlane.f32.xlu1 %v1261_v9  ;;  %v3735_v11 = vpop.f32.mrf.mxu1 }
 0x322   : > { %1268 = vmax.xlane.f32.xlu0 %v1267_v12 }
 0x37f   : > { %v4350_v13 = vpop.f32.mrf.mxu1 }
 0x380   : > { %v1270_v23 = vsel %vm1257_vm5, %v4350_v13, -inf }
 0x381   : > { %v3746_v14 = vpop.f32.mrf.mxu1 }
 0x383   : > { %v4352_v15 = vpop.f32.mrf.mxu1  ;;  %v4354_v16 = vpop.f32.mrf.mxu0 }
 0x384   : > { %v1276_v17 = vsel %vm1257_vm5, %v4354_v16, -inf  ;;  %v1273_v29 = vsel %vm1257_vm5, %v4352_v15, -inf }
 0x385   : > { %v3752_v18 = vpop.f32.mrf.mxu0  ;;  %1277 = vmax.xlane.f32.xlu1 %v1276_v17  ;;  %v3747_v19 = vpop.f32.mrf.mxu1 }
 0x387   : > { %v4358_v20 = vpop.f32.mrf.mxu0  ;;  %v4360_v21 = vpop.f32.mrf.mxu1 }
 0x388   : > { %v1279_v22 = vsel %vm1257_vm5, %v4358_v20, -inf  ;;  %v1282_v35 = vsel %vm1257_vm5, %v4360_v21, -inf }
 0x389   : > { %v3753_v24 = vpop.f32.mrf.mxu0  ;;  %1280 = vmax.xlane.f32.xlu0 %v1279_v22  ;;  %1271 = vmax.xlane.f32.xlu1 %v1270_v23  ;;  %v3758_v25 = vpop.f32.mrf.mxu1 }
 0x38b   : > { %v4366_v26 = vpop.f32.mrf.mxu1  ;;  %v4368_v27 = vpop.f32.mrf.mxu0 }
 0x38c   : > { %v1288_v28 = vsel %vm1257_vm5, %v4368_v27, -inf  ;;  %v1285_v49 = vsel %vm1257_vm5, %v4366_v26, -inf }
 0x38d   : > { %v3764_v30 = vpop.f32.mrf.mxu0  ;;  %1289 = vmax.xlane.f32.xlu1 %v1288_v28  ;;  %1274 = vmax.xlane.f32.xlu0 %v1273_v29  ;;  %v3759_v31 = vpop.f32.mrf.mxu1 }
 0x38f   : > { %v4374_v32 = vpop.f32.mrf.mxu0  ;;  %v4376_v33 = vpop.f32.mrf.mxu1 }
 0x390   : > { %v1291_v34 = vsel %vm1257_vm5, %v4374_v32, -inf  ;;  %v1294_v54 = vsel %vm1257_vm5, %v4376_v33, -inf }
 0x391   : > { %v3765_v36 = vpop.f32.mrf.mxu0  ;;  %1292 = vmax.xlane.f32.xlu0 %v1291_v34  ;;  %1283 = vmax.xlane.f32.xlu1 %v1282_v35  ;;  %v3770_v37 = vpop.f32.mrf.mxu1 }
 0x393   : > { %v4382_v38 = vpop.f32.mrf.mxu1  ;;  %v4384_v40 = vpop.f32.mrf.mxu0 }
 0x394   : > { %v1300_v48 = vsel %vm1257_vm5, %v4384_v40, -inf  ;;  %v1297_v56 = vsel %vm1257_vm5, %v4382_v38, -inf }
 0x395   : > { %v3776_v50 = vpop.f32.mrf.mxu0  ;;  %1301 = vmax.xlane.f32.xlu1 %v1300_v48  ;;  %1286 = vmax.xlane.f32.xlu0 %v1285_v49  ;;  %v3771_v51 = vpop.f32.mrf.mxu1 }
 0x397   : > { %v4390_v52 = vpop.f32.mrf.mxu0 }
 0x398   : > { %v1303_v53 = vsel %vm1257_vm5, %v4390_v52, -inf }
 0x399   : > { %v3777_v55 = vpop.f32.mrf.mxu0  ;;  %1304 = vmax.xlane.f32.xlu0 %v1303_v53  ;;  %1295 = vmax.xlane.f32.xlu1 %v1294_v54 }
 0x39d   : > { %1298 = vmax.xlane.f32.xlu0 %v1297_v56 }
 0x3a3   : > { %v1266_v57 = vpop.xlane.xlu0 %1265 }
 0x3a4   : > { %v1308_v60 = vsub.f32 %v4336_v2, %v1266_v57 }
 0x3a6   : > { %v1326_v62 = vmul.f32 1.442695, %v1308_v60 }
 0x3a7   : > { %v1260_v58 = vpop.xlane.xlu0 %1259  ;;  %v1263_v61 = vpop.xlane.xlu1 %1262 }
 0x3a8   : > { %v1307_v63 = vsub.f32 %v4340_v6, %v1263_v61  ;;  %3955 = vpow2.f32 %v1326_v62 }
 0x3aa   : > { %1536 = vrot.lane.b32.xlu1 %v4269_v43, %s4053_s5 }
 0x3ab   : > { %v1269_v59 = vpop.xlane.xlu0 %1268 }
 0x3ac   : > { %v1309_v43 = vsub.f32 %v4342_v7, %v1269_v59 }
 0x3ae   : > { %1583 = vrot.lane.b32.xlu1 %v4274_v45, %s4053_s5  ;;  %v1306_v45 = vsub.f32 %v4334_v1, %v1260_v58  ;;  %v1328_v0 = vmul.f32 1.442695, %v1309_v43 }
 0x3b0   : > { %v1322_v3 = vmul.f32 1.442695, %v1306_v45  ;;  %3957 = vpow2.f32 %v1328_v0 }
 0x3b2   : > { %1677 = vrot.lane.b32.xlu1 %v4272_v44, %s4053_s5  ;;  %v1324_v44 = vmul.f32 1.442695, %v1307_v63 }
 0x3b3   : > { %1489 = vrot.lane.b32.xlu0 %v4257_v41, %s4053_s5 }
 0x3b4   : > { %3959 = vpow2.f32 %v1324_v44 }
 0x3b5   : > { %3961 = vpow2.f32 %v1322_v3  ;;  %v4412_v41 = vpop.eup %3955 }
 0x3b6   : > { %v1360_v4 = vsel %vm1257_vm5, %v4412_v41, 0.0 }
 0x3b7   : > { %1630 = vrot.lane.b32.xlu0 %v4267_v42, %s4053_s5 }
 0x3bd   : > { %v4414_v42 = vpop.eup %3957 }
 0x3be   : > { %v1363_v5 = vsel %vm1257_vm5, %v4414_v42, 0.0 }
 0x3c1   : > { %v4416_v2 = vpop.eup %3959 }
 0x3c2   : > { %v4422_v1 = vpop.eup %3961  ;;  %v1357_v7 = vsel %vm1257_vm5, %v4416_v2, 0.0 }
 0x3c3   : > { %v1354_v6 = vsel %vm1257_vm5, %v4422_v1, 0.0 }
 0x3d6   : > { %1361 = vadd.xlane.f32.xlu1 %v1360_v4  ;;  %1364 = vadd.xlane.f32.xlu0 %v1363_v5 }
 0x3da   : > { %1355 = vadd.xlane.f32.xlu1 %v1354_v6  ;;  %1358 = vadd.xlane.f32.xlu0 %v1357_v7 }
 0x40e   : > { %v1278_v8 = vpop.xlane.xlu1 %1277 }
 0x40f   : > { %v1312_v9 = vsub.f32 %v4354_v16, %v1278_v8 }
 0x411   : > { %v1334_v10 = vmul.f32 1.442695, %v1312_v9 }
 0x412   : > { %v1272_v11 = vpop.xlane.xlu1 %1271  ;;  %v1281_v12 = vpop.xlane.xlu0 %1280 }
 0x413   : > { %3963 = vpow2.f32 %v1334_v10  ;;  %v1310_v14 = vsub.f32 %v4350_v13, %v1272_v11  ;;  %v1313_v17 = vsub.f32 %v4358_v20, %v1281_v12 }
 0x415   : > { %v1330_v18 = vmul.f32 1.442695, %v1310_v14  ;;  %v1336_v19 = vmul.f32 1.442695, %v1313_v17 }
 0x416   : > { %v1290_v22 = vpop.xlane.xlu1 %1289  ;;  %v1275_v23 = vpop.xlane.xlu0 %1274 }
 0x417   : > { %3965 = vpow2.f32 %v1330_v18  ;;  %v1316_v24 = vsub.f32 %v4368_v27, %v1290_v22  ;;  %v1311_v25 = vsub.f32 %v4352_v15, %v1275_v23 }
 0x418   : > { %3967 = vpow2.f32 %v1336_v19 }
 0x419   : > { %v1342_v28 = vmul.f32 1.442695, %v1316_v24  ;;  %v1332_v16 = vmul.f32 1.442695, %v1311_v25 }
 0x41a   : > { %v1284_v29 = vpop.xlane.xlu1 %1283  ;;  %v1293_v30 = vpop.xlane.xlu0 %1292 }
 0x41b   : > { %3969 = vpow2.f32 %v1342_v28  ;;  %v1314_v31 = vsub.f32 %v4360_v21, %v1284_v29  ;;  %v1317_v13 = vsub.f32 %v4374_v32, %v1293_v30 }
 0x41c   : > { %3971 = vpow2.f32 %v1332_v16 }
 0x41d   : > { %v1338_v20 = vmul.f32 1.442695, %v1314_v31  ;;  %v1344_v34 = vmul.f32 1.442695, %v1317_v13 }
 0x41e   : > { %v1302_v35 = vpop.xlane.xlu1 %1301  ;;  %v1287_v36 = vpop.xlane.xlu0 %1286 }
 0x41f   : > { %3973 = vpow2.f32 %v1338_v20  ;;  %v1320_v27 = vsub.f32 %v4384_v40, %v1302_v35  ;;  %v1315_v15 = vsub.f32 %v4366_v26, %v1287_v36 }
 0x420   : > { %v4437_v37 = vpop.eup %3963  ;;  %3975 = vpow2.f32 %v1344_v34 }
 0x421   : > { %v1350_v48 = vmul.f32 1.442695, %v1320_v27  ;;  %v1340_v49 = vmul.f32 1.442695, %v1315_v15  ;;  %v1372_v21 = vsel %vm1257_vm5, %v4437_v37, 0.0 }
 0x422   : > { %v1296_v50 = vpop.xlane.xlu1 %1295  ;;  %1373 = vadd.xlane.f32.xlu1 %v1372_v21  ;;  %v1305_v32 = vpop.xlane.xlu0 %1304 }
 0x423   : > { %3977 = vpow2.f32 %v1350_v48  ;;  %v1318_v51 = vsub.f32 %v4376_v33, %v1296_v50  ;;  %v1321_v53 = vsub.f32 %v4390_v52, %v1305_v32 }
 0x424   : > { %v4443_v54 = vpop.eup %3965  ;;  %3979 = vpow2.f32 %v1340_v49 }
 0x425   : > { %v4445_v26 = vpop.eup %3967  ;;  %v1346_v40 = vmul.f32 1.442695, %v1318_v51  ;;  %v1352_v55 = vmul.f32 1.442695, %v1321_v53  ;;  %v1366_v56 = vsel %vm1257_vm5, %v4443_v54, 0.0 }
 0x426   : > { %1367 = vadd.xlane.f32.xlu1 %v1366_v56  ;;  %v1375_v57 = vsel %vm1257_vm5, %v4445_v26, 0.0  ;;  %v1299_v58 = vpop.xlane.xlu0 %1298  ;;  %v1537_v12 = vpop.permute.xlu1 %1536 }
 0x427   : > { %3981 = vpow2.f32 %v1346_v40  ;;  %1376 = vadd.xlane.f32.xlu0 %v1375_v57  ;;  %v1319_v33 = vsub.f32 %v4382_v38, %v1299_v58 }
 0x428   : > { %v4452_v52 = vpop.eup %3969  ;;  %3983 = vpow2.f32 %v1352_v55 }
 0x429   : > { %v4454_v59 = vpop.eup %3971  ;;  %v1348_v60 = vmul.f32 1.442695, %v1319_v33  ;;  %v1384_v61 = vsel %vm1257_vm5, %v4452_v52, 0.0 }
 0x42a   : > { %1385 = vadd.xlane.f32.xlu1 %v1384_v61  ;;  %v1369_v43 = vsel %vm1257_vm5, %v4454_v59, 0.0  ;;  %v1490_v62 = vpop.permute.xlu0 %1489  ;;  %v1584_v14 = vpop.permute.xlu1 %1583 }
 0x42b   : > { %3985 = vpow2.f32 %v1348_v60  ;;  %1370 = vadd.xlane.f32.xlu0 %v1369_v43  ;;  %3785 = vmatpush3.bf16.msra.mxu0 %v1490_v62 }
 0x42c   : > { %v4460_v63 = vpop.eup %3973  ;;  %3796 = vmatprep.subr.bf16.mxu0 %v4047_v39 }
 0x42d   : > { %v4463_v38 = vpop.eup %3975  ;;  %v1378_v45 = vsel %vm1257_vm5, %v4460_v63, 0.0 }
 0x42e   : > { %1379 = vadd.xlane.f32.xlu1 %v1378_v45  ;;  %v1387_v0 = vsel %vm1257_vm5, %v4463_v38, 0.0  ;;  %v1678_v17 = vpop.permute.xlu1 %1677  ;;  %v4493_v18 = vpop.permute.xlu0 %1630 }
 0x42f   : > { %1388 = vadd.xlane.f32.xlu0 %v1387_v0 }
 0x430   : > { %v4469_v44 = vpop.eup %3977 }
 0x431   : > { %v4471_v3 = vpop.eup %3979  ;;  %v1396_v4 = vsel %vm1257_vm5, %v4469_v44, 0.0 }
 0x432   : > { %1397 = vadd.xlane.f32.xlu1 %v1396_v4  ;;  %v1381_v5 = vsel %vm1257_vm5, %v4471_v3, 0.0 }
 0x433   : > { %1382 = vadd.xlane.f32.xlu0 %v1381_v5 }
 0x434   : > { %v4477_v6 = vpop.eup %3981 }
 0x435   : > { %v4479_v7 = vpop.eup %3983  ;;  %v1390_v8 = vsel %vm1257_vm5, %v4477_v6, 0.0 }
 0x436   : > { %1391 = vadd.xlane.f32.xlu1 %v1390_v8  ;;  %v1399_v9 = vsel %vm1257_vm5, %v4479_v7, 0.0 }
 0x437   : > { %1400 = vadd.xlane.f32.xlu0 %v1399_v9 }
 0x438   : > { %v4485_v10 = vpop.eup %3985 }
 0x439   : > { %v1393_v11 = vsel %vm1257_vm5, %v4485_v10, 0.0 }
 0x43b   : > { %1394 = vadd.xlane.f32.xlu0 %v1393_v11 }
 0x447   : > { %1771 = vrot.lane.b32.xlu1 %v4278_v46, %s4053_s5 }
 0x451   : > { %1724 = vrot.lane.b32.xlu0 %v4280_v47, %s4053_s5 }
 0x45f   : > { %v1362_v19 = vpop.xlane.xlu1 %1361  ;;  %v1365_v22 = vpop.xlane.xlu0 %1364 }
 0x460   : > { %3987 = vrcp.f32 %v1362_v19 }
 0x461   : > { %3989 = vrcp.f32 %v1365_v22 }
 0x463   : > { %v1356_v23 = vpop.xlane.xlu1 %1355  ;;  %v1359_v24 = vpop.xlane.xlu0 %1358 }
 0x464   : > { %3991 = vrcp.f32 %v1356_v23 }
 0x465   : > { %3993 = vrcp.f32 %v1359_v24 }
 0x46d   : > { %v3988_v25 = vpop.eup %3987 }
 0x46e   : > { %v3990_v28 = vpop.eup %3989  ;;  %v1420_v46 = vmul.f32 %v3988_v25, %v4412_v41 }
 0x46f   : > { %v1421_v16 = vmul.f32 %v3990_v28, %v4414_v42 }
 0x471   : > { %v3992_v29 = vpop.eup %3991  ;;  %v1435_v47 = vpack.c.bf16 %v1421_v16, %v1420_v46 }
 0x472   : > { %v3994_v30 = vpop.eup %3993  ;;  %v1418_v31 = vmul.f32 %v3992_v29, %v4422_v1 }
 0x473   : > { %3787 = vmatmul.mubr.msk.bf16.vlgmr.msra.gmra.mxu0 %vm1257_vm5, %v1435_v47  ;;  %v1419_v13 = vmul.f32 %v3994_v30, %v4416_v2 }
 0x474   : > { %3797 = vmatpush3.bf16.msra.mxu0 %v1584_v14  ;;  %3798 = vmatprep.mubr.msk.bf16.mxu0 %vm4050_vm3, %v4047_v39 }
 0x475   : > { %v1434_v20 = vpack.c.bf16 %v1419_v13, %v1418_v31  ;;  %3808 = vmatprep.subr.bf16.mxu0 %v4047_v39 }
 0x477   : > { %3781 = vmatmul.mubr.msk.bf16.vlgmr.msra.gmra.mxu1 %vm1257_vm5, %v1434_v20 }
 0x478   : > { %3791 = vmatpush3.bf16.msra.mxu1 %v1537_v12  ;;  %3792 = vmatprep.mubr.msk.bf16.mxu1 %vm4050_vm3, %v4047_v39 }
 0x479   : > { %3802 = vmatprep.subr.bf16.mxu1 %v4047_v39 }
 0x4ab   : > { %v1374_v41 = vpop.xlane.xlu1 %1373 }
 0x4ac   : > { %3995 = vrcp.f32 %v1374_v41  ;;  %v3889_v41 = vld [vmem:[%s4165_s30 + $0x8] sm:$0xff]  }
 0x4af   : > { %v1368_v42 = vpop.xlane.xlu1 %1367 }
 0x4b0   : > { %v1377_v1 = vpop.xlane.xlu0 %1376 }
 0x4b1   : > { %3997 = vrcp.f32 %v1377_v1 }
 0x4b2   : > { %3999 = vrcp.f32 %v1368_v42 }
 0x4b3   : > { %v1386_v2 = vpop.xlane.xlu1 %1385 }
 0x4b4   : > { %v1371_v34 = vpop.xlane.xlu0 %1370 }
 0x4b5   : > { %4001 = vrcp.f32 %v1371_v34 }
 0x4b6   : > { %4003 = vrcp.f32 %v1386_v2 }
 0x4b7   : > { %v1380_v35 = vpop.xlane.xlu1 %1379 }
 0x4b8   : > { %v1389_v36 = vpop.xlane.xlu0 %1388 }
 0x4b9   : > { %4005 = vrcp.f32 %v1389_v36  ;;  %v3996_v15 = vpop.eup %3995  ;;  %v3890_v36 = vld [vmem:[%s4165_s30] sm:$0xff]  }
 0x4ba   : > { %4007 = vrcp.f32 %v1380_v35  ;;  %v1424_v21 = vmul.f32 %v3996_v15, %v4437_v37 }
 0x4bb   : > { %v1398_v27 = vpop.xlane.xlu1 %1397 }
 0x4bc   : > { %v1383_v48 = vpop.xlane.xlu0 %1382 }
 0x4bd   : > { %4009 = vrcp.f32 %v1383_v48 }
 0x4be   : > { %v3998_v49 = vpop.eup %3997  ;;  %4011 = vrcp.f32 %v1398_v27 }
 0x4bf   : > { %v1425_v50 = vmul.f32 %v3998_v49, %v4445_v26  ;;  %v4000_v32 = vpop.eup %3999  ;;  %v1392_v51 = vpop.xlane.xlu1 %1391 }
 0x4c0   : > { %v1401_v53 = vpop.xlane.xlu0 %1400  ;;  %v1422_v56 = vmul.f32 %v4000_v32, %v4443_v54 }
 0x4c1   : > { %4013 = vrcp.f32 %v1401_v53  ;;  %v1437_v40 = vpack.c.bf16 %v1425_v50, %v1424_v21 }
 0x4c2   : > { %v4002_v55 = vpop.eup %4001  ;;  %4015 = vrcp.f32 %v1392_v51 }
 0x4c3   : > { %3799 = vmatmul.mubr.msk.bf16.vlgmr.msra.gmra.mxu0 %vm1257_vm5, %v1437_v40  ;;  %v1423_v57 = vmul.f32 %v4002_v55, %v4454_v59  ;;  %v4004_v58 = vpop.eup %4003  ;;  %v1772_v62 = vpop.permute.xlu1 %1771 }
 0x4c4   : > { %3809 = vmatpush3.bf16.msra.mxu0 %v1678_v17  ;;  %v1395_v33 = vpop.xlane.xlu0 %1394  ;;  %3810 = vmatprep.mubr.msk.bf16.mxu0 %vm4050_vm3, %v4047_v39  ;;  %v1428_v60 = vmul.f32 %v4004_v58, %v4452_v52 }
 0x4c5   : > { %4017 = vrcp.f32 %v1395_v33  ;;  %v1436_v37 = vpack.c.bf16 %v1423_v57, %v1422_v56  ;;  %3820 = vmatprep.subr.bf16.mxu0 %v4047_v39 }
 0x4c6   : > { %v4006_v26 = vpop.eup %4005 }
 0x4c7   : > { %3793 = vmatmul.mubr.msk.bf16.vlgmr.msra.gmra.mxu1 %vm1257_vm5, %v1436_v37  ;;  %v1429_v61 = vmul.f32 %v4006_v26, %v4463_v38  ;;  %v4008_v54 = vpop.eup %4007 }
 0x4c8   : > { %3803 = vmatpush3.bf16.msra.mxu1 %v4493_v18  ;;  %3804 = vmatprep.mubr.msk.bf16.mxu1 %vm4050_vm3, %v4047_v39  ;;  %v1426_v45 = vmul.f32 %v4008_v54, %v4460_v63  ;;  %v1725_v5 = vpop.permute.xlu0 %1724 }
 0x4c9   : > { %v1439_v59 = vpack.c.bf16 %v1429_v61, %v1428_v60  ;;  %3814 = vmatprep.subr.bf16.mxu1 %v4047_v39 }
 0x4ca   : > { %v4010_v43 = vpop.eup %4009 }
 0x4cb   : > { %3811 = vmatmul.mubr.msk.bf16.vlgmr.msra.gmra.mxu0 %vm1257_vm5, %v1439_v59  ;;  %v1427_v0 = vmul.f32 %v4010_v43, %v4471_v3  ;;  %v4012_v52 = vpop.eup %4011 }
 0x4cc   : > { %3821 = vmatpush3.bf16.msra.mxu0 %v1772_v62  ;;  %3822 = vmatprep.mubr.msk.bf16.mxu0 %vm4050_vm3, %v4047_v39  ;;  %v1432_v8 = vmul.f32 %v4012_v52, %v4469_v44 }
 0x4cd   : > { %v1438_v38 = vpack.c.bf16 %v1427_v0, %v1426_v45 }
 0x4ce   : > { %v4014_v4 = vpop.eup %4013 }
 0x4cf   : > { %3805 = vmatmul.mubr.msk.bf16.vlgmr.msra.gmra.mxu1 %vm1257_vm5, %v1438_v38  ;;  %v1433_v9 = vmul.f32 %v4014_v4, %v4479_v7  ;;  %v4016_v11 = vpop.eup %4015 }
 0x4d0   : > { %3815 = vmatpush3.bf16.msra.mxu1 %v1725_v5  ;;  %3816 = vmatprep.mubr.msk.bf16.mxu1 %vm4050_vm3, %v4047_v39  ;;  %v1430_v12 = vmul.f32 %v4016_v11, %v4477_v6 }
 0x4d1   : > { %v1441_v63 = vpack.c.bf16 %v1433_v9, %v1432_v8  ;;  %3826 = vmatprep.subr.bf16.mxu1 %v3889_v41 }
 0x4d2   : > { %v4018_v3 = vpop.eup %4017 }
 0x4d3   : > { %3823 = vmatmul.mubr.msk.bf16.vlgmr.msra.gmra.mxu0 %vm1257_vm5, %v1441_v63  ;;  %v1431_v14 = vmul.f32 %v4018_v3, %v4485_v10 }
 0x4d5   : > { %v1440_v17 = vpack.c.bf16 %v1431_v14, %v1430_v12 }
 0x4d7   : > { %3817 = vmatmul.mubr.msk.bf16.vlgmr.msra.gmra.mxu1 %vm1257_vm5, %v1440_v17 }
 0x4d8   : > { %3827 = vmatpush3.bf16.msra.mxu1 %v3889_v41  ;;  %v4036_v41 = vld [vmem:[#allocation2 + $0x10] sm:$0xff] }
 0x4d9   : > { %3828 = vmatprep.subr.bf16.mxu1 %v3890_v36 }
 0x4dc   : > { %3829 = vmatpush3.bf16.msra.mxu1 %v3890_v36  ;;  %v4038_v36 = vld [vmem:[#allocation2 + $0x18] sm:$0xff] }
 0x533   : > { %v4536_v18 = vpop.f32.mrf.mxu0 }
 0x535   : > { %v3788_v44 = vpop.f32.mrf.mxu0 }
 0x537   : > { %v4538_v7 = vpop.f32.mrf.mxu1  ;;  %v4540_v19 = vpop.f32.mrf.mxu0 }
 0x539   : > { %v3782_v22 = vpop.f32.mrf.mxu1  ;;  %v3789_v39 = vpop.f32.mrf.mxu0 }
 0x53b   : > { %v4542_v23 = vpop.f32.mrf.mxu1 }
 0x53d   : > { %v3783_v24 = vpop.f32.mrf.mxu1 }
 0x583   : > { %v1623_v25 = vpop.f32.mrf.mxu0 }
 0x585   : > { %v3800_v6 = vpop.f32.mrf.mxu0 }
 0x586   : > { %v3447_v6 = vld [vmem:[%s4861_s26] ss:$0 sm:$0xff] }
 0x587   : > { %v1576_v28 = vpop.f32.mrf.mxu1  ;;  %v1626_v10 = vpop.f32.mrf.mxu0 }
 0x588   : > { %v3857_v46 = vpack.i.bf16 %v1626_v10, %v1623_v25 }
 0x589   : > { %v3794_v16 = vpop.f32.mrf.mxu1  ;;  %v3801_v29 = vpop.f32.mrf.mxu0 }
 0x58a   : > { %3858 = vrot.lane.b32.xlu1 %v3857_v46, %s4054_s17  ;;  %v4035_v29 = vld [vmem:[#allocation2] sm:$0xff] }
 0x58b   : > { %v1579_v47 = vpop.f32.mrf.mxu1  ;;  %v1717_v30 = vpop.f32.mrf.mxu0 }
 0x58c   : > { %v3862_v31 = vpack.i.bf16 %v1579_v47, %v1576_v28 }
 0x58d   : > { %v3795_v13 = vpop.f32.mrf.mxu1  ;;  %v3812_v20 = vpop.f32.mrf.mxu0 }
 0x58e   : > { %3863 = vrot.lane.b32.xlu0 %v3862_v31, %s4054_s17 }
 0x58f   : > { %v1670_v42 = vpop.f32.mrf.mxu1  ;;  %v1720_v1 = vpop.f32.mrf.mxu0 }
 0x590   : > { %v3867_v2 = vpack.i.bf16 %v1720_v1, %v1717_v30  ;;  %v4037_v1 = vld [vmem:[#allocation2 + $0x8] sm:$0xff] }
 0x591   : > { %v3806_v34 = vpop.f32.mrf.mxu1  ;;  %v3813_v35 = vpop.f32.mrf.mxu0 }
 0x592   : > { %3868 = vrot.lane.b32.xlu1 %v3867_v2, %s4055_s7 }
 0x593   : > { %v1673_v27 = vpop.f32.mrf.mxu1  ;;  %v1811_v15 = vpop.f32.mrf.mxu0 }
 0x594   : > { %v3872_v48 = vpack.i.bf16 %v1673_v27, %v1670_v42 }
 0x595   : > { %v3807_v49 = vpop.f32.mrf.mxu1  ;;  %v3824_v21 = vpop.f32.mrf.mxu0 }
 0x596   : > { %3873 = vrot.lane.b32.xlu0 %v3872_v48, %s4055_s7 }
 0x597   : > { %v1764_v50 = vpop.f32.mrf.mxu1  ;;  %v1814_v32 = vpop.f32.mrf.mxu0 }
 0x598   : > { %v3882_v51 = vpack.i.bf16 %v1814_v32, %v1811_v15 }
 0x599   : > { %v3818_v53 = vpop.f32.mrf.mxu1  ;;  %v3825_v40 = vpop.f32.mrf.mxu0 }
 0x59a   : > { %3883 = vrot.lane.b32.xlu1 %v3882_v51, %s4056_s27 }
 0x59b   : > { %v1767_v55 = vpop.f32.mrf.mxu1 }
 0x59c   : > { %v3877_v56 = vpack.i.bf16 %v1767_v55, %v1764_v50 }
 0x59d   : > { %v3819_v57 = vpop.f32.mrf.mxu1 }
 0x59e   : > { %3878 = vrot.lane.b32.xlu0 %v3877_v56, %s4056_s27 }
 0x5fc   : > { %v3859_v58 = vpop.permute.xlu1 %3858 }
 0x5fd   : > { %v3861_v60 = vunpack.i.h.bf16 %v3859_v58  ;;  %v3860_v61 = vunpack.i.l.bf16 %v3859_v58 }
 0x5ff   : > { %v1869_v5 = vsel %vm866_vm4, %v4540_v19, %v3861_v60  ;;  %v1868_v8 = vsel %vm866_vm4, %v4536_v18, %v3860_v61 }
 0x600   : > { %v3864_v33 = vpop.permute.xlu0 %3863 }
 0x601   : > { %v3866_v54 = vunpack.i.h.bf16 %v3864_v33  ;;  %v3865_v59 = vunpack.i.l.bf16 %v3864_v33 }
 0x603   : > { %v1867_v9 = vsel %vm866_vm4, %v4542_v23, %v3866_v54  ;;  %v1866_v11 = vsel %vm866_vm4, %v4538_v7, %v3865_v59 }
 0x604   : > { %v3869_v37 = vpop.permute.xlu1 %3868 }
 0x605   : > { %v3871_v62 = vunpack.i.h.bf16 %v3869_v37  ;;  %v3870_v45 = vunpack.i.l.bf16 %v3869_v37 }
 0x607   : > { %v1873_v3 = vsel %vm1257_vm5, %v1869_v5, %v3871_v62  ;;  %v1872_v12 = vsel %vm1257_vm5, %v1868_v8, %v3870_v45  ;;  %v2042_v62 = vld [vmem:[%s4175_s22 + $0x40] sm:$0xff] }
 0x608   : > { %v3874_v26 = vpop.permute.xlu0 %3873  ;;  %v2043_v45 = vld [vmem:[%s4175_s22 + $0x60] sm:$0xff] }
 0x609   : > { %v3876_v0 = vunpack.i.h.bf16 %v3874_v26  ;;  %v3875_v52 = vunpack.i.l.bf16 %v3874_v26 }
 0x60b   : > { %v1870_v44 = vsel %vm1257_vm5, %v1866_v11, %v3875_v52  ;;  %v1871_v19 = vsel %vm1257_vm5, %v1867_v9, %v3876_v0  ;;  %v2181_v0 = vld [vmem:[%s4175_s22 + $0x48] sm:$0xff]  ;;  %v3457_v52 = vcombine.high %v2042_v62, %v2043_v45  ;;  %v2040_v9 = vld [vmem:[%s4175_s22] sm:$0xff] }
 0x60c   : > { %v3884_v43 = vpop.permute.xlu1 %3883  ;;  %v2041_v11 = vld [vmem:[%s4175_s22 + $0x20] sm:$0xff] }
 0x60d   : > { %v3886_v38 = vunpack.i.h.bf16 %v3884_v43  ;;  %v3885_v4 = vunpack.i.l.bf16 %v3884_v43  ;;  %2094 = vmatprep.subr.bf16.mxu0 %v3457_v52  ;;  %v3909_v52 = vld [vmem:[%s4187_s29 + $0x98] sm:$0xff]  }
 0x60f   : > { %v1878_v22 = vsel %vm1874_vm6, %v1873_v3, %v3886_v38  ;;  %v1877_v18 = vsel %vm1874_vm6, %v1872_v12, %v3885_v4  ;;  %v2182_v38 = vld [vmem:[%s4175_s22 + $0x68] sm:$0xff]  ;;  %v3456_v4 = vcombine.low %v2042_v62, %v2043_v45  ;;  %v3454_v3 = vcombine.low %v2040_v9, %v2041_v11  ;;  %v3906_v62 = vld [vmem:[%s4187_s29 + $0x20] sm:$0xff]   ;;  %v3907_v45 = vld [vmem:[%s4187_s29 + $0xd8] sm:$0xff]  }
 0x610   : > { %v3879_v63 = vpop.permute.xlu0 %3878  ;;  %v1880_v25 = vpack.c.bf16 %v1878_v22, %v1877_v18  ;;  %v3462_v5 = vcombine.low %v2181_v0, %v2182_v38  ;;  %v3463_v8 = vcombine.high %v2181_v0, %v2182_v38  ;;  %v3455_v12 = vcombine.high %v2040_v9, %v2041_v11  ;;  %v3891_v22 = vld [vmem:[%s4187_s29 + $0xf8] sm:$0xff]   ;;  %v3914_v9 = vld [vmem:[%s4187_s29 + $0x10] sm:$0xff]   ;;  %v3915_v11 = vld [vmem:[%s4187_s29 + $0xc8] sm:$0xff]  }
 0x611   : > { %v3881_v14 = vunpack.i.h.bf16 %v3879_v63  ;;  %v3880_v17 = vunpack.i.l.bf16 %v3879_v63  ;;  %v2179_v63 = vld [vmem:[%s4175_s22 + $0x8] sm:$0xff]  ;;  %2095 = vmatpush1.bf16.msra.mxu0 %v3456_v4  ;;  %v3892_v18 = vld [vmem:[%s4187_s29 + $0x78] sm:$0xff]   ;;  %v3911_v4 = vld [vmem:[%s4187_s29 + $0xd0] sm:$0xff]  }
 0x612   : > { %2227 = vmatprep.subr.bf16.mxu1 %v3463_v8  ;;  %2096 = vmatprep.subr.bf16.mxu0 %v3455_v12  ;;  %v3908_v0 = vld [vmem:[%s4187_s29 + $0x58] sm:$0xff]   ;;  %v3913_v8 = vld [vmem:[%s4187_s29 + $0x90] sm:$0xff]   ;;  %v3918_v12 = vld [vmem:[%s4187_s29 + $0x8] sm:$0xff]  }
 0x613   : > { %v1875_v39 = vsel %vm1874_vm6, %v1870_v44, %v3880_v17  ;;  %v1876_v24 = vsel %vm1874_vm6, %v1871_v19, %v3881_v14  ;;  %v2180_v14 = vld [vmem:[%s4175_s22 + $0x28] sm:$0xff]  ;;  %v4057_v19 = vmov 0   ;;  %v3910_v38 = vld [vmem:[%s4187_s29 + $0x18] sm:$0xff]  }
 0x614   : > { %v1879_v23 = vpack.c.bf16 %v1876_v24, %v1875_v39  ;;  %v3460_v17 = vcombine.low %v2179_v63, %v2180_v14  ;;  %v3461_v44 = vcombine.high %v2179_v63, %v2180_v14  ;;  %2114 = vmatprep.mubr.bf16.mxu0 %v4057_v19  ;;  %v3916_v63 = vld [vmem:[%s4187_s29 + $0x48] sm:$0xff]   ;;  %v3919_v14 = vld [vmem:[%s4187_s29 + $0xc0] sm:$0xff]  }
 0x615   : > { %2097 = vmatpush1.bf16.msra.mxu0 %v3454_v3  ;;  %v3917_v3 = vld [vmem:[%s4187_s29 + $0x88] sm:$0xff]  }
 0x616   : > { %3830 = vmatprep.mubr.msk.bf16.mxu1 %vm792_vm2, %v1879_v23  ;;  %3598 = vmatprep.subr.bf16.mxu0 %v3891_v22  ;;  %v3922_v22 = vld [vmem:[%s4187_s29] sm:$0xff]  }
 0x617   : > { %3831 = vmatmul.mubr.msk.bf16.vlgmr.msra.gmra.mxu1 %vm792_vm2, %v1880_v25 }
 0x618   : > { %2228 = vmatpush1.bf16.msra.mxu1 %v3462_v5  ;;  %2247 = vmatprep.mubr.bf16.mxu1 %v4057_v19  ;;  %v3912_v5 = vld [vmem:[%s4187_s29 + $0x50] sm:$0xff]  }
 0x619   : > { %2229 = vmatprep.subr.bf16.mxu1 %v3461_v44  ;;  %v3921_v44 = vld [vmem:[%s4187_s29 + $0x80] sm:$0xff]  }
 0x61c   : > { %2230 = vmatpush1.bf16.msra.mxu1 %v3460_v17  ;;  %v3920_v17 = vld [vmem:[%s4187_s29 + $0x40] sm:$0xff]  }
 0x61d   : > { %3626 = vmatprep.subr.bf16.mxu1 %v3892_v18  ;;  %v4672_v18 = vld [vmem:[%s4175_s22 + $0x50] sm:$0xff] }
 0x6d7   : > { %v3832_v7 = vpop.f32.mrf.mxu1 }
 0x6d8   : > { %v1953_v10 = vadd.f32 %v3832_v7, %v3447_v6 }
 0x6d9   : > { %v1944_v28 = vpop.f32.mrf.mxu1 }
 0x6da   : > { %v1945_v46 = vadd.f32 %v3447_v6, %v1944_v28  ;;  %v1961_v42 = vadd.f32 %v4036_v41, %v1953_v10 }
 0x6db   : > { %v3833_v16 = vpop.f32.mrf.mxu1 }
 0x6dc   : > { %v1959_v47 = vadd.f32 %v4035_v29, %v1945_v46  ;;  %v1956_v31 = vadd.f32 %v3833_v16, %v3447_v6  ;;  %v1971_v35 = vsel %vm792_vm2, %v1961_v42, 0.0 }
 0x6dd   : > { %v1947_v30 = vpop.f32.mrf.mxu1 }
 0x6de   : > { %v1948_v13 = vadd.f32 %v3447_v6, %v1947_v30  ;;  %v1965_v20 = vsel %vm792_vm2, %v1959_v47, 0.0  ;;  %v1962_v27 = vadd.f32 %v4038_v36, %v1956_v31 }
 0x6df   : > { %1966 = vadd.xlane.f32.xlu0 %v1965_v20 }
 0x6e0   : > { %v1960_v2 = vadd.f32 %v4037_v1, %v1948_v13  ;;  %v1974_v15 = vsel %vm792_vm2, %v1962_v27, 0.0  ;;  %v3452_v13 = vld [vmem:[%s645_s2] ss:$0 sm:$0xff]  ;;  %s4862_s2 = sld [smem:[#allocation4_spill]] }
 0x6e2   : > { %v1968_v34 = vsel %vm792_vm2, %v1960_v2, 0.0 }
 0x6e3   : > { %1969 = vadd.xlane.f32.xlu1 %v1968_v34  ;;  %1972 = vadd.xlane.f32.xlu0 %v1971_v35 }
 0x6e7   : > { %1975 = vadd.xlane.f32.xlu0 %v1974_v15 }
 0x768   : > { %v1967_v48 = vpop.xlane.xlu0 %1966 }
 0x769   : > { %v1978_v49 = vmul.f32 0.03125, %v1967_v48 }
 0x76b   : > { %v4569_v21 = vsub.f32 %v1959_v47, %v1978_v49 }
 0x76c   : > { %v1970_v50 = vpop.xlane.xlu1 %1969  ;;  %v1973_v32 = vpop.xlane.xlu0 %1972 }
 0x76d   : > { %v1979_v51 = vmul.f32 0.03125, %v1970_v50  ;;  %v1980_v53 = vmul.f32 0.03125, %v1973_v32  ;;  %v1986_v40 = vmul.f32 %v4569_v21, %v4569_v21  ;;  %v3893_v50 = vld [vmem:[%s4187_s29 + $0xb8] sm:$0xff]  }
 0x76e   : > { %v3894_v32 = vld [vmem:[%s4187_s29 + $0x38] sm:$0xff]  }
 0x76f   : > { %v4573_v55 = vsub.f32 %v1960_v2, %v1979_v51  ;;  %v4575_v56 = vsub.f32 %v1961_v42, %v1980_v53  ;;  %v1990_v57 = vsel %vm792_vm2, %v1986_v40, 0.0  ;;  %v3453_v2 = vld [vmem:[%s648_s24] ss:$0 sm:$0xff]  ;;  %v3895_v51 = vld [vmem:[%s4187_s29 + $0xf0] sm:$0xff]  }
 0x770   : > { %1991 = vadd.xlane.f32.xlu1 %v1990_v57  ;;  %v1976_v58 = vpop.xlane.xlu0 %1975  ;;  %v3896_v53 = vld [vmem:[%s4187_s29 + $0x70] sm:$0xff]  }
 0x771   : > { %v1981_v33 = vmul.f32 0.03125, %v1976_v58  ;;  %v1987_v37 = vmul.f32 %v4573_v55, %v4573_v55  ;;  %v1988_v26 = vmul.f32 %v4575_v56, %v4575_v56  ;;  %v3898_v57 = vld [vmem:[%s4187_s29 + $0x30] sm:$0xff]   ;;  %v3899_v58 = vld [vmem:[%s4187_s29 + $0xe8] sm:$0xff]  }
 0x773   : > { %v4582_v60 = vsub.f32 %v1962_v27, %v1981_v33  ;;  %v1993_v61 = vsel %vm792_vm2, %v1987_v37, 0.0  ;;  %v1996_v54 = vsel %vm792_vm2, %v1988_v26, 0.0  ;;  %v3900_v33 = vld [vmem:[%s4187_s29 + $0x68] sm:$0xff]  }
 0x774   : > { %1994 = vadd.xlane.f32.xlu0 %v1993_v61  ;;  %1997 = vadd.xlane.f32.xlu1 %v1996_v54  ;;  %v3902_v61 = vld [vmem:[%s4187_s29 + $0x28] sm:$0xff]   ;;  %v3903_v54 = vld [vmem:[%s4187_s29 + $0xe0] sm:$0xff]  }
 0x775   : > { %v1989_v59 = vmul.f32 %v4582_v60, %v4582_v60 }
 0x777   : > { %v1999_v43 = vsel %vm792_vm2, %v1989_v59, 0.0  ;;  %v3904_v59 = vld [vmem:[%s4187_s29 + $0x60] sm:$0xff]  }
 0x778   : > { %2000 = vadd.xlane.f32.xlu0 %v1999_v43  ;;  %v3905_v43 = vld [vmem:[%s4187_s29 + $0xa0] sm:$0xff]  }
 0x7f9   : > { %v1992_v39 = vpop.xlane.xlu1 %1991 }
 0x7fa   : > { %v2002_v24 = vmul.f32 0.03125, %v1992_v39  ;;  %v4675_v39 = vld [vmem:[%s4175_s22 + $0x70] sm:$0xff] }
 0x7fc   : > { %v2006_v23 = vadd.f32 1e-05, %v2002_v24  ;;  %v4678_v24 = vld [vmem:[%s4175_s22 + $0x58] sm:$0xff] }
 0x7fd   : > { %v1998_v25 = vpop.xlane.xlu1 %1997  ;;  %v1995_v7 = vpop.xlane.xlu0 %1994 }
 0x7fe   : > { %4019 = vrsqrt.f32 %v2006_v23  ;;  %v2004_v6 = vmul.f32 0.03125, %v1998_v25  ;;  %v2003_v28 = vmul.f32 0.03125, %v1995_v7  ;;  %v3500_v23 = vcombine.low %v4672_v18, %v4675_v39  ;;  %v4685_v7 = vld [vmem:[%s4175_s22 + $0x78] sm:$0xff] }
 0x7ff   : > { %v3501_v25 = vcombine.high %v4672_v18, %v4675_v39 }
 0x800   : > { %v2007_v10 = vadd.f32 1e-05, %v2003_v28  ;;  %v2008_v46 = vadd.f32 1e-05, %v2004_v6  ;;  %v3522_v6 = vcombine.low %v4678_v24, %v4685_v7  ;;  %v3523_v28 = vcombine.high %v4678_v24, %v4685_v7  ;;  %v3925_v7 = vld [vmem:[%s4187_s29 + $0x138] sm:$0xff]  }
 0x801   : > { %v2001_v16 = vpop.xlane.xlu0 %2000 }
 0x802   : > { %v2005_v29 = vmul.f32 0.03125, %v2001_v16  ;;  %4021 = vrsqrt.f32 %v2007_v10  ;;  %v2046_v10 = vlaneseq }
 0x803   : > { %4023 = vrsqrt.f32 %v2008_v46 }
 0x804   : > { %v2009_v47 = vadd.f32 1e-05, %v2005_v29  ;;  %v2047_v46 = vshrl.u32 %v2046_v10, 7 }
 0x806   : > { %4025 = vrsqrt.f32 %v2009_v47  ;;  %v4691_v16 = vsub.s32 1, %v2047_v46  ;;  %v4693_v29 = vsub.s32 0, %v2047_v46  ;;  %v2044_v47 = vld [vmem:[%s4862_s2] sm:$0x3] }
 0x80b   : > { %v4020_v30 = vpop.eup %4019 }
 0x80c   : > { %v2014_v31 = vmul.f32 %v4020_v30, %v4569_v21  ;;  %v2183_v30 = vld [vmem:[%s4862_s2 + $0x2] sm:$0x3] }
 0x80e   : > { %v2024_v42 = vmul.f32 %v3452_v13, %v2014_v31 }
 0x80f   : > { %v4022_v20 = vpop.eup %4021 }
 0x810   : > { %v2015_v41 = vmul.f32 %v4022_v20, %v4573_v55  ;;  %v4024_v1 = vpop.eup %4023  ;;  %v4614_v27 = vadd.f32 %v3453_v2, %v2024_v42  ;;  %v2053_v20 = vrot.slane %v2044_v47, %v4691_v16  ;;  %v2049_v42 = vrot.slane %v2044_v47, %v4693_v29 }
 0x811   : > { %v2016_v48 = vmul.f32 %v4024_v1, %v4575_v56  ;;  %v3897_v56 = vld [vmem:[%s4187_s29 + $0xb0] sm:$0xff]   ;;  %v2188_v1 = vrot.slane %v2183_v30, %v4693_v29 }
 0x812   : > { %v2025_v35 = vmul.f32 %v3452_v13, %v2015_v41  ;;  %v2192_v41 = vrot.slane %v2183_v30, %v4691_v16 }
 0x813   : > { %v4026_v34 = vpop.eup %4025  ;;  %v2026_v40 = vmul.f32 %v3452_v13, %v2016_v48 }
 0x814   : > { %v2017_v36 = vmul.f32 %v4026_v34, %v4582_v60  ;;  %v4616_v15 = vadd.f32 %v3453_v2, %v2025_v35  ;;  %v3901_v60 = vld [vmem:[%s4187_s29 + $0xa8] sm:$0xff]  }
 0x815   : > { %v4639_v37 = vadd.f32 %v3453_v2, %v2026_v40 }
 0x816   : > { %v4621_v49 = vpack.c.bf16 %v4616_v15, %v4614_v27  ;;  %v2027_v21 = vmul.f32 %v3452_v13, %v2017_v36 }
 0x818   : > { %3458 = vmatmul.mubr.msk.bf16.vlgmr.msra.gmra.mxu0 %vm792_vm2, %v4621_v49  ;;  %3464 = vmatmul.mubr.msk.bf16.vlgmr.msra.gmra.mxu1 %vm792_vm2, %v4621_v49  ;;  %v4633_v55 = vadd.f32 %v3453_v2, %v2027_v21 }
 0x819   : > { %2124 = vmatprep.mubr.bf16.mxu0 %v4057_v19  ;;  %2257 = vmatprep.mubr.bf16.mxu1 %v4057_v19 }
 0x81a   : > { %3599 = vmatpush3.bf16.msra.mxu0 %v3893_v50  ;;  %3627 = vmatpush3.bf16.msra.mxu1 %v3894_v32  ;;  %v4643_v26 = vpack.c.bf16 %v4633_v55, %v4639_v37 }
 0x81b   : > { %3600 = vmatprep.subr.bf16.mxu0 %v3895_v51  ;;  %3628 = vmatprep.subr.bf16.mxu1 %v3896_v53 }
 0x81e   : > { %3601 = vmatpush3.bf16.msra.mxu0 %v3897_v56  ;;  %3629 = vmatpush3.bf16.msra.mxu1 %v3898_v57 }
 0x81f   : > { %3602 = vmatprep.subr.bf16.mxu0 %v3899_v58  ;;  %3630 = vmatprep.subr.bf16.mxu1 %v3900_v33 }
 0x820   : > { %3459 = vmatmul.mubr.msk.bf16.gmra.mxu0 %vm792_vm2, %v4643_v26  ;;  %3465 = vmatmul.mubr.msk.bf16.gmra.mxu1 %vm792_vm2, %v4643_v26 }
 0x822   : > { %3603 = vmatpush3.bf16.msra.mxu0 %v3901_v60  ;;  %3631 = vmatpush3.bf16.msra.mxu1 %v3902_v61 }
 0x823   : > { %3604 = vmatprep.subr.bf16.mxu0 %v3903_v54  ;;  %3632 = vmatprep.subr.bf16.mxu1 %v3904_v59  ;;  %v2602_v59 = vld [vmem:[%s4175_s22 + $0x10] sm:$0xff] }
 0x826   : > { %3605 = vmatpush3.bf16.msra.mxu0 %v3905_v43  ;;  %3633 = vmatpush3.bf16.msra.mxu1 %v3906_v62  ;;  %v2603_v43 = vld [vmem:[%s4175_s22 + $0x30] sm:$0xff] }
 0x827   : > { %3606 = vmatprep.subr.bf16.mxu0 %v3907_v45  ;;  %3634 = vmatprep.subr.bf16.mxu1 %v3908_v0 }
 0x82a   : > { %3607 = vmatpush3.bf16.msra.mxu0 %v3909_v52  ;;  %3635 = vmatpush3.bf16.msra.mxu1 %v3910_v38  ;;  %v2884_v38 = vld [vmem:[%s4175_s22 + $0x18] sm:$0xff] }
 0x82b   : > { %3608 = vmatprep.subr.bf16.mxu0 %v3911_v4  ;;  %3636 = vmatprep.subr.bf16.mxu1 %v3912_v5  ;;  %v2885_v4 = vld [vmem:[%s4175_s22 + $0x38] sm:$0xff] }
 0x82e   : > { %3609 = vmatpush3.bf16.msra.mxu0 %v3913_v8  ;;  %3637 = vmatpush3.bf16.msra.mxu1 %v3914_v9 }
 0x82f   : > { %3610 = vmatprep.subr.bf16.mxu0 %v3915_v11  ;;  %3638 = vmatprep.subr.bf16.mxu1 %v3916_v63 }
 0x832   : > { %3611 = vmatpush3.bf16.msra.mxu0 %v3917_v3  ;;  %3639 = vmatpush3.bf16.msra.mxu1 %v3918_v12  ;;  %v3499_v12 = vcombine.high %v2602_v59, %v2603_v43 }
 0x833   : > { %3612 = vmatprep.subr.bf16.mxu0 %v3919_v14  ;;  %3640 = vmatprep.subr.bf16.mxu1 %v3920_v17 }
 0x836   : > { %3613 = vmatpush3.bf16.msra.mxu0 %v3921_v44  ;;  %3641 = vmatpush3.bf16.msra.mxu1 %v3922_v22 }
 0x837   : > { %2650 = vmatprep.subr.bf16.mxu1 %v3501_v25  ;;  %2932 = vmatprep.subr.bf16.mxu0 %v3523_v28  ;;  %v3521_v28 = vcombine.high %v2884_v38, %v2885_v4 }
 0x8d8   : > { %v2116_v31 = vpop.f32.mrf.mxu0  ;;  %v2249_v13 = vpop.f32.mrf.mxu1 }
 0x8d9   : > { %v2117_v51 = vadd.f32 %v2116_v31, %v2049_v42  ;;  %v2250_v53 = vadd.f32 %v2249_v13, %v2188_v1 }
 0x8da   : > { %v2118_v2 = vpop.f32.mrf.mxu0  ;;  %v2251_v34 = vpop.f32.mrf.mxu1 }
 0x8db   : > { %v2119_v48 = vadd.f32 %v2118_v2, %v2053_v20  ;;  %v2252_v21 = vadd.f32 %v2251_v34, %v2192_v41  ;;  %v2135_v5 = vmax.f32 %v2117_v51, 0.0  ;;  %v2268_v8 = vmax.f32 %v2250_v53, 0.0 }
 0x8dc   : > { %v2120_v35 = vpop.f32.mrf.mxu0  ;;  %v2253_v36 = vpop.f32.mrf.mxu1  ;;  %v3498_v34 = vcombine.low %v2602_v59, %v2603_v43  ;;  %v3937_v59 = vld [vmem:[%s4187_s29 + $0x120] sm:$0xff]  }
 0x8dd   : > { %v2121_v50 = vadd.f32 %v2120_v35, %v2049_v42  ;;  %v2254_v32 = vadd.f32 %v2253_v36, %v2188_v1  ;;  %v2136_v62 = vmax.f32 %v2119_v48, 0.0  ;;  %v2269_v45 = vmax.f32 %v2252_v21, 0.0  ;;  %v3938_v43 = vld [vmem:[%s4187_s29 + $0x1a0] sm:$0xff]  }
 0x8de   : > { %v2122_v40 = vpop.f32.mrf.mxu0  ;;  %v2255_v56 = vpop.f32.mrf.mxu1  ;;  %v3520_v48 = vcombine.low %v2884_v38, %v2885_v4  ;;  %v3943_v38 = vld [vmem:[%s4187_s29 + $0x150] sm:$0xff]  }
 0x8df   : > { %v2123_v57 = vadd.f32 %v2122_v40, %v2053_v20  ;;  %v2256_v58 = vadd.f32 %v2255_v56, %v2192_v41  ;;  %v2137_v33 = vmax.f32 %v2121_v50, 0.0  ;;  %v2270_v60 = vmax.f32 %v2254_v32, 0.0  ;;  %v3924_v50 = vld [vmem:[%s4187_s29 + $0x1f8] sm:$0xff]   ;;  %v3927_v56 = vld [vmem:[%s4187_s29 + $0x170] sm:$0xff]  }
 0x8e0   : > { %v2126_v61 = vpop.f32.mrf.mxu0  ;;  %v2259_v54 = vpop.f32.mrf.mxu1  ;;  %v3944_v4 = vld [vmem:[%s4187_s29 + $0x1d0] sm:$0xff]  }
 0x8e1   : > { %v2138_v0 = vmax.f32 %v2123_v57, 0.0  ;;  %v2271_v52 = vmax.f32 %v2256_v58, 0.0  ;;  %v2143_v14 = vpack.c.bf16 %v2137_v33, %v2135_v5  ;;  %v2276_v17 = vpack.c.bf16 %v2270_v60, %v2268_v8  ;;  %v3928_v57 = vld [vmem:[%s4187_s29 + $0x1f0] sm:$0xff]   ;;  %v3932_v33 = vld [vmem:[%s4187_s29 + $0x1e8] sm:$0xff]  }
 0x8e2   : > { %v2128_v9 = vpop.f32.mrf.mxu0  ;;  %v2261_v11 = vpop.f32.mrf.mxu1  ;;  %v2127_v30 = vadd.f32 %v2126_v61, %v2049_v42  ;;  %v2260_v31 = vadd.f32 %v2259_v54, %v2188_v1  ;;  %v3930_v58 = vld [vmem:[%s4187_s29 + $0x1b0] sm:$0xff]   ;;  %v3933_v60 = vld [vmem:[%s4187_s29 + $0x128] sm:$0xff]   ;;  %v3936_v54 = vld [vmem:[%s4187_s29 + $0x1e0] sm:$0xff]  }
 0x8e3   : > { %v2144_v63 = vpack.c.bf16 %v2138_v0, %v2136_v62  ;;  %v2277_v3 = vpack.c.bf16 %v2271_v52, %v2269_v45  ;;  %v2129_v44 = vadd.f32 %v2128_v9, %v2053_v20  ;;  %v2262_v10 = vadd.f32 %v2261_v11, %v2192_v41  ;;  %v3934_v61 = vld [vmem:[%s4187_s29 + $0x1a8] sm:$0xff]   ;;  %v3939_v62 = vld [vmem:[%s4187_s29 + $0x158] sm:$0xff]   ;;  %v3945_v5 = vld [vmem:[%s4187_s29 + $0x110] sm:$0xff]  }
 0x8e4   : > { %v2130_v22 = vpop.f32.mrf.mxu0  ;;  %v2263_v25 = vpop.f32.mrf.mxu1  ;;  %v2272_v40 = vmax.f32 %v2260_v31, 0.0  ;;  %v3940_v45 = vld [vmem:[%s4187_s29 + $0x1d8] sm:$0xff]   ;;  %v3946_v8 = vld [vmem:[%s4187_s29 + $0x190] sm:$0xff]   ;;  %v3947_v9 = vld [vmem:[%s4187_s29 + $0x148] sm:$0xff]  }
 0x8e5   : > { %v2131_v46 = vadd.f32 %v2130_v22, %v2049_v42  ;;  %v2264_v47 = vadd.f32 %v2263_v25, %v2188_v1  ;;  %2440 = vmatprep.mubr.bf16.mxu0 %v2277_v3  ;;  %2585 = vmatprep.mubr.bf16.mxu1 %v2144_v63  ;;  %v3923_v1 = vld [vmem:[%s4187_s29 + $0x178] sm:$0xff]   ;;  %v2140_v32 = vmax.f32 %v2129_v44, 0.0  ;;  %v2273_v51 = vmax.f32 %v2262_v10, 0.0  ;;  %v3948_v11 = vld [vmem:[%s4187_s29 + $0x1c8] sm:$0xff]   ;;  %v3954_v44 = vld [vmem:[%s4187_s29 + $0x180] sm:$0xff]  }
 0x8e6   : > { %v2132_v13 = vpop.f32.mrf.mxu0  ;;  %v2265_v2 = vpop.f32.mrf.mxu1  ;;  %2441 = vmatmul.mubr.bf16.vlgmr.msra.gmra.mxu0 %v2276_v17  ;;  %2586 = vmatmul.mubr.bf16.vlgmr.msra.gmra.mxu1 %v2143_v14  ;;  %v3941_v0 = vld [vmem:[%s4187_s29 + $0x118] sm:$0xff]   ;;  %v3949_v63 = vld [vmem:[%s4187_s29 + $0x108] sm:$0xff]   ;;  %v3952_v14 = vld [vmem:[%s4187_s29 + $0x1c0] sm:$0xff]  }
 0x8e7   : > { %v2133_v35 = vadd.f32 %v2132_v13, %v2053_v20  ;;  %v2266_v36 = vadd.f32 %v2265_v2, %v2192_v41  ;;  %2651 = vmatpush1.bf16.msra.mxu1 %v3500_v23  ;;  %2933 = vmatpush1.bf16.msra.mxu0 %v3522_v6  ;;  %v2141_v42 = vmax.f32 %v2131_v46, 0.0  ;;  %v2274_v21 = vmax.f32 %v2264_v47, 0.0  ;;  %v3926_v6 = vld [vmem:[%s4187_s29 + $0x1b8] sm:$0xff]   ;;  %v3950_v3 = vld [vmem:[%s4187_s29 + $0x188] sm:$0xff]   ;;  %v3953_v17 = vld [vmem:[%s4187_s29 + $0x100] sm:$0xff]  }
 0x8e8   : > { %2652 = vmatprep.subr.bf16.mxu1 %v3499_v12  ;;  %2934 = vmatprep.subr.bf16.mxu0 %v3521_v28  ;;  %v2139_v41 = vmax.f32 %v2127_v30, 0.0  ;;  %v3942_v52 = vld [vmem:[%s4187_s29 + $0x198] sm:$0xff]   ;;  %v3951_v12 = vld [vmem:[%s4187_s29 + $0x140] sm:$0xff]  }
 0x8e9   : > { %v2142_v53 = vmax.f32 %v2133_v35, 0.0  ;;  %v2275_v20 = vmax.f32 %v2266_v36, 0.0  ;;  %v2278_v23 = vpack.c.bf16 %v2274_v21, %v2272_v40 }
 0x8ea   : > { %v2145_v24 = vpack.c.bf16 %v2141_v42, %v2139_v41 }
 0x8eb   : > { %v2146_v18 = vpack.c.bf16 %v2142_v53, %v2140_v32  ;;  %v2279_v39 = vpack.c.bf16 %v2275_v20, %v2273_v51  ;;  %2653 = vmatpush1.bf16.msra.mxu1 %v3498_v34  ;;  %2935 = vmatpush1.bf16.msra.mxu0 %v3520_v48 }
 0x8ec   : > { %3654 = vmatprep.subr.bf16.mxu1 %v3923_v1  ;;  %3682 = vmatprep.subr.bf16.mxu0 %v3924_v50 }
 0x8ed   : > { %2448 = vmatprep.mubr.bf16.mxu0 %v2279_v39  ;;  %2593 = vmatprep.mubr.bf16.mxu1 %v2146_v18 }
 0x8ee   : > { %2449 = vmatmul.mubr.bf16.gmra.mxu0 %v2278_v23  ;;  %2594 = vmatmul.mubr.bf16.gmra.mxu1 %v2145_v24  ;;  %v2606_v23 = vld [vmem:[%s4862_s2 + $0x4] sm:$0x3] }
 0x8ef   : > { %2670 = vmatprep.mubr.bf16.mxu1 %v4057_v19  ;;  %2952 = vmatprep.mubr.bf16.mxu0 %v4057_v19 }
 0x8f6   : > { %3502 = vmatmul.mubr.msk.bf16.vlgmr.msra.gmra.mxu1 %vm792_vm2, %v4621_v49  ;;  %3524 = vmatmul.mubr.msk.bf16.vlgmr.msra.gmra.mxu0 %vm792_vm2, %v4621_v49  ;;  %v3929_v49 = vld [vmem:[%s4187_s29 + $0x130] sm:$0xff]  }
 0x8f7   : > { %2680 = vmatprep.mubr.bf16.mxu1 %v4057_v19  ;;  %2962 = vmatprep.mubr.bf16.mxu0 %v4057_v19  ;;  %v3931_v19 = vld [vmem:[%s4187_s29 + $0x168] sm:$0xff]  }
 0x8f8   : > { %3655 = vmatpush3.bf16.msra.mxu1 %v3925_v7  ;;  %3683 = vmatpush3.bf16.msra.mxu0 %v3926_v6  ;;  %v2888_v7 = vld [vmem:[%s4862_s2 + $0x6] sm:$0x3] }
 0x8f9   : > { %3656 = vmatprep.subr.bf16.mxu1 %v3927_v56  ;;  %3684 = vmatprep.subr.bf16.mxu0 %v3928_v57 }
 0x8fc   : > { %3657 = vmatpush3.bf16.msra.mxu1 %v3929_v49  ;;  %3685 = vmatpush3.bf16.msra.mxu0 %v3930_v58  ;;  %v2615_v49 = vrot.slane %v2606_v23, %v4691_v16  ;;  %v2897_v58 = vrot.slane %v2888_v7, %v4691_v16 }
 0x8fd   : > { %3658 = vmatprep.subr.bf16.mxu1 %v3931_v19  ;;  %3686 = vmatprep.subr.bf16.mxu0 %v3932_v33  ;;  %v2611_v19 = vrot.slane %v2606_v23, %v4693_v29  ;;  %v2893_v33 = vrot.slane %v2888_v7, %v4693_v29 }
 0x8fe   : > { %3503 = vmatmul.mubr.msk.bf16.gmra.mxu1 %vm792_vm2, %v4643_v26  ;;  %3525 = vmatmul.mubr.msk.bf16.gmra.mxu0 %vm792_vm2, %v4643_v26  ;;  %v3935_v26 = vld [vmem:[%s4187_s29 + $0x160] sm:$0xff]  }
 0x900   : > { %3659 = vmatpush3.bf16.msra.mxu1 %v3933_v60  ;;  %3687 = vmatpush3.bf16.msra.mxu0 %v3934_v61 }
 0x901   : > { %3660 = vmatprep.subr.bf16.mxu1 %v3935_v26  ;;  %3688 = vmatprep.subr.bf16.mxu0 %v3936_v54 }
 0x904   : > { %3661 = vmatpush3.bf16.msra.mxu1 %v3937_v59  ;;  %3689 = vmatpush3.bf16.msra.mxu0 %v3938_v43 }
 0x905   : > { %3662 = vmatprep.subr.bf16.mxu1 %v3939_v62  ;;  %3690 = vmatprep.subr.bf16.mxu0 %v3940_v45 }
 0x908   : > { %3663 = vmatpush3.bf16.msra.mxu1 %v3941_v0  ;;  %3691 = vmatpush3.bf16.msra.mxu0 %v3942_v52 }
 0x909   : > { %3664 = vmatprep.subr.bf16.mxu1 %v3943_v38  ;;  %3692 = vmatprep.subr.bf16.mxu0 %v3944_v4 }
 0x90c   : > { %3665 = vmatpush3.bf16.msra.mxu1 %v3945_v5  ;;  %3693 = vmatpush3.bf16.msra.mxu0 %v3946_v8 }
 0x90d   : > { %3666 = vmatprep.subr.bf16.mxu1 %v3947_v9  ;;  %3694 = vmatprep.subr.bf16.mxu0 %v3948_v11 }
 0x910   : > { %3667 = vmatpush3.bf16.msra.mxu1 %v3949_v63  ;;  %3695 = vmatpush3.bf16.msra.mxu0 %v3950_v3 }
 0x911   : > { %3668 = vmatprep.subr.bf16.mxu1 %v3951_v12  ;;  %3696 = vmatprep.subr.bf16.mxu0 %v3952_v14 }
 0x914   : > { %3669 = vmatpush3.bf16.msra.mxu1 %v3953_v17  ;;  %3697 = vmatpush3.bf16.msra.mxu0 %v3954_v44 }
 0x9a6   : > { %v3614_v22 = vpop.f32.mrf.mxu0  ;;  %v3642_v25 = vpop.f32.mrf.mxu1 }
 0x9a8   : > { %v3615_v28 = vpop.f32.mrf.mxu0  ;;  %v3643_v10 = vpop.f32.mrf.mxu1 }
 0x9a9   : > { %v3616_v46 = vadd.f32 %v3615_v28, %v3614_v22  ;;  %v3644_v47 = vadd.f32 %v3643_v10, %v3642_v25 }
 0x9aa   : > { %v3617_v30 = vpop.f32.mrf.mxu0  ;;  %v3645_v31 = vpop.f32.mrf.mxu1 }
 0x9ab   : > { %v4755_v13 = vadd.f32 %v3644_v47, %v3616_v46 }
 0x9ac   : > { %v3618_v2 = vpop.f32.mrf.mxu0  ;;  %v3646_v34 = vpop.f32.mrf.mxu1 }
 0x9ad   : > { %v3619_v35 = vadd.f32 %v3618_v2, %v3617_v30  ;;  %v3647_v36 = vadd.f32 %v3646_v34, %v3645_v31 }
 0x9ae   : > { %v3620_v48 = vpop.f32.mrf.mxu0  ;;  %v3648_v42 = vpop.f32.mrf.mxu1 }
 0x9af   : > { %v4757_v21 = vadd.f32 %v3647_v36, %v3619_v35 }
 0x9b0   : > { %v3621_v1 = vpop.f32.mrf.mxu0  ;;  %v3649_v50 = vpop.f32.mrf.mxu1 }
 0x9b1   : > { %v3622_v32 = vadd.f32 %v3621_v1, %v3620_v48  ;;  %v3650_v51 = vadd.f32 %v3649_v50, %v3648_v42 }
 0x9b2   : > { %v3623_v53 = vpop.f32.mrf.mxu0  ;;  %v3651_v20 = vpop.f32.mrf.mxu1 }
 0x9b3   : > { %v4759_v41 = vadd.f32 %v3650_v51, %v3622_v32 }
 0x9b4   : > { %v3624_v40 = vpop.f32.mrf.mxu0  ;;  %v3652_v18 = vpop.f32.mrf.mxu1 }
 0x9b5   : > { %v3625_v39 = vadd.f32 %v3624_v40, %v3623_v53  ;;  %v3653_v24 = vadd.f32 %v3652_v18, %v3651_v20 }
 0x9b6   : > { %v2672_v6 = vpop.f32.mrf.mxu1  ;;  %v2954_v56 = vpop.f32.mrf.mxu0 }
 0x9b7   : > { %v4763_v57 = vadd.f32 %v3653_v24, %v3625_v39  ;;  %v2673_v0 = vadd.f32 %v2672_v6, %v2611_v19  ;;  %v2955_v52 = vadd.f32 %v2954_v56, %v2893_v33 }
 0x9b8   : > { %v2674_v60 = vpop.f32.mrf.mxu1  ;;  %v2956_v61 = vpop.f32.mrf.mxu0 }
 0x9b9   : > { %v2675_v59 = vadd.f32 %v2674_v60, %v2615_v49  ;;  %v2957_v43 = vadd.f32 %v2956_v61, %v2897_v58  ;;  %v2691_v17 = vmax.f32 %v2673_v0, 0.0  ;;  %v2973_v44 = vmax.f32 %v2955_v52, 0.0  ;;  %v3542_v52 = vld [vmem:[%s642_s18] ss:$0 sm:$0xff] }
 0x9ba   : > { %v2676_v26 = vpop.f32.mrf.mxu1  ;;  %v2958_v54 = vpop.f32.mrf.mxu0 }
 0x9bb   : > { %v2677_v62 = vadd.f32 %v2676_v26, %v2611_v19  ;;  %v2959_v45 = vadd.f32 %v2958_v54, %v2893_v33  ;;  %v2692_v3 = vmax.f32 %v2675_v59, 0.0  ;;  %v2974_v29 = vmax.f32 %v2957_v43, 0.0 }
 0x9bc   : > { %v2678_v38 = vpop.f32.mrf.mxu1  ;;  %v2960_v4 = vpop.f32.mrf.mxu0 }
 0x9bd   : > { %v2679_v5 = vadd.f32 %v2678_v38, %v2615_v49  ;;  %v2961_v8 = vadd.f32 %v2960_v4, %v2897_v58  ;;  %v2693_v9 = vmax.f32 %v2677_v62, 0.0  ;;  %v2975_v16 = vmax.f32 %v2959_v45, 0.0 }
 0x9be   : > { %v2682_v11 = vpop.f32.mrf.mxu1  ;;  %v2964_v63 = vpop.f32.mrf.mxu0 }
 0x9bf   : > { %v2694_v12 = vmax.f32 %v2679_v5, 0.0  ;;  %v2976_v14 = vmax.f32 %v2961_v8, 0.0  ;;  %v2699_v46 = vpack.c.bf16 %v2693_v9, %v2691_v17  ;;  %v2981_v47 = vpack.c.bf16 %v2975_v16, %v2973_v44 }
 0x9c0   : > { %v2684_v22 = vpop.f32.mrf.mxu1  ;;  %v2966_v25 = vpop.f32.mrf.mxu0  ;;  %v2683_v48 = vadd.f32 %v2682_v11, %v2611_v19  ;;  %v2965_v42 = vadd.f32 %v2964_v63, %v2893_v33 }
 0x9c1   : > { %v2700_v28 = vpack.c.bf16 %v2694_v12, %v2692_v3  ;;  %v2982_v10 = vpack.c.bf16 %v2976_v14, %v2974_v29  ;;  %v2685_v30 = vadd.f32 %v2684_v22, %v2615_v49  ;;  %v2967_v34 = vadd.f32 %v2966_v25, %v2897_v58 }
 0x9c2   : > { %v2686_v31 = vpop.f32.mrf.mxu1  ;;  %v2968_v2 = vpop.f32.mrf.mxu0  ;;  %v2695_v23 = vmax.f32 %v2683_v48, 0.0  ;;  %v2977_v7 = vmax.f32 %v2965_v42, 0.0 }
 0x9c3   : > { %v2687_v35 = vadd.f32 %v2686_v31, %v2611_v19  ;;  %v2969_v36 = vadd.f32 %v2968_v2, %v2893_v33  ;;  %2863 = vmatprep.mubr.bf16.mxu1 %v2700_v28  ;;  %3145 = vmatprep.mubr.bf16.mxu0 %v2982_v10  ;;  %v2696_v40 = vmax.f32 %v2685_v30, 0.0  ;;  %v2978_v18 = vmax.f32 %v2967_v34, 0.0 }
 0x9c4   : > { %v2688_v1 = vpop.f32.mrf.mxu1  ;;  %2864 = vmatmul.mubr.bf16.vlgmr.msra.gmra.mxu1 %v2699_v46  ;;  %v2970_v50 = vpop.f32.mrf.mxu0  ;;  %3146 = vmatmul.mubr.bf16.vlgmr.msra.gmra.mxu0 %v2981_v47 }
 0x9c5   : > { %v2689_v32 = vadd.f32 %v2688_v1, %v2615_v49  ;;  %v2971_v51 = vadd.f32 %v2970_v50, %v2897_v58  ;;  %v2697_v53 = vmax.f32 %v2687_v35, 0.0  ;;  %v2979_v20 = vmax.f32 %v2969_v36, 0.0 }
 0x9c7   : > { %v2698_v39 = vmax.f32 %v2689_v32, 0.0  ;;  %v2980_v24 = vmax.f32 %v2971_v51, 0.0  ;;  %v2701_v60 = vpack.c.bf16 %v2697_v53, %v2695_v23  ;;  %v2983_v61 = vpack.c.bf16 %v2979_v20, %v2977_v7 }
 0x9c9   : > { %v2702_v6 = vpack.c.bf16 %v2698_v39, %v2696_v40  ;;  %v2984_v56 = vpack.c.bf16 %v2980_v24, %v2978_v18 }
 0x9cb   : > { %2871 = vmatprep.mubr.bf16.mxu1 %v2702_v6  ;;  %3153 = vmatprep.mubr.bf16.mxu0 %v2984_v56 }
 0x9cc   : > { %2872 = vmatmul.mubr.bf16.gmra.mxu1 %v2701_v60  ;;  %3154 = vmatmul.mubr.bf16.gmra.mxu0 %v2983_v61 }
 0xa84   : > { %v3670_v19 = vpop.f32.mrf.mxu1  ;;  %v3698_v49 = vpop.f32.mrf.mxu0 }
 0xa86   : > { %v3671_v58 = vpop.f32.mrf.mxu1  ;;  %v3699_v33 = vpop.f32.mrf.mxu0 }
 0xa87   : > { %v3672_v26 = vadd.f32 %v3671_v58, %v3670_v19  ;;  %v3700_v62 = vadd.f32 %v3699_v33, %v3698_v49 }
 0xa88   : > { %v3673_v54 = vpop.f32.mrf.mxu1  ;;  %v3701_v59 = vpop.f32.mrf.mxu0 }
 0xa89   : > { %v2880_v43 = vadd.f32 %v3672_v26, %v4755_v13 }
 0xa8a   : > { %v3674_v45 = vpop.f32.mrf.mxu1  ;;  %v3702_v0 = vpop.f32.mrf.mxu0 }
 0xa8b   : > { %v3162_v38 = vadd.f32 %v3700_v62, %v2880_v43  ;;  %v3675_v4 = vadd.f32 %v3674_v45, %v3673_v54  ;;  %v3703_v16 = vadd.f32 %v3702_v0, %v3701_v59 }
 0xa8c   : > { %v3676_v5 = vpop.f32.mrf.mxu1  ;;  %v3704_v8 = vpop.f32.mrf.mxu0 }
 0xa8d   : > { %v2881_v9 = vadd.f32 %v3675_v4, %v4757_v21  ;;  %v3173_v11 = vadd.f32 %v3542_v52, %v3162_v38 }
 0xa8e   : > { %v3677_v63 = vpop.f32.mrf.mxu1  ;;  %v3705_v3 = vpop.f32.mrf.mxu0 }
 0xa8f   : > { %v3163_v29 = vadd.f32 %v3703_v16, %v2881_v9  ;;  %v3678_v13 = vadd.f32 %v3677_v63, %v3676_v5  ;;  %v3177_v12 = vadd.f32 %v3173_v11, %v4614_v27  ;;  %v3706_v22 = vadd.f32 %v3705_v3, %v3704_v8  ;;  %v3543_v5 = vld [vmem:[%s651_s8] ss:$0 sm:$0xff] }
 0xa90   : > { %v3679_v14 = vpop.f32.mrf.mxu1  ;;  %v3707_v17 = vpop.f32.mrf.mxu0  ;;  %v3544_v9 = vld [vmem:[%s654_s3] ss:$0 sm:$0xff]  ;;  %s4863_s3 = sld [smem:[#allocation11_spill]] (!%p3545_p5) }
 0xa91   : > { %v2882_v44 = vadd.f32 %v3678_v13, %v4759_v41  ;;  %v3183_v25 = vsel %vm792_vm2, %v3177_v12, 0.0  ;;  %v3174_v28 = vadd.f32 %v3542_v52, %v3163_v29 }
 0xa92   : > { %v3680_v10 = vpop.f32.mrf.mxu1  ;;  %v3708_v46 = vpop.f32.mrf.mxu0  ;;  %3184 = vadd.xlane.f32.xlu1 %v3183_v25 }
 0xa93   : > { %v3164_v21 = vadd.f32 %v3706_v22, %v2882_v44  ;;  %v3681_v47 = vadd.f32 %v3680_v10, %v3679_v14  ;;  %v3178_v30 = vadd.f32 %v3174_v28, %v4616_v15  ;;  %v3709_v2 = vadd.f32 %v3708_v46, %v3707_v17 }
 0xa95   : > { %v2883_v31 = vadd.f32 %v3681_v47, %v4763_v57  ;;  %v3186_v27 = vsel %vm792_vm2, %v3178_v30, 0.0  ;;  %v3175_v34 = vadd.f32 %v3542_v52, %v3164_v21 }
 0xa96   : > { %3187 = vadd.xlane.f32.xlu0 %v3186_v27 }
 0xa97   : > { %v3165_v35 = vadd.f32 %v3709_v2, %v2883_v31  ;;  %v3179_v41 = vadd.f32 %v3175_v34, %v4639_v37 }
 0xa99   : > { %v3189_v36 = vsel %vm792_vm2, %v3179_v41, 0.0  ;;  %v3176_v48 = vadd.f32 %v3542_v52, %v3165_v35 }
 0xa9a   : > { %3190 = vadd.xlane.f32.xlu1 %v3189_v36 }
 0xa9b   : > { %v3180_v42 = vadd.f32 %v3176_v48, %v4633_v55 }
 0xa9d   : > { %v3192_v1 = vsel %vm792_vm2, %v3180_v42, 0.0 }
 0xa9e   : > { %3193 = vadd.xlane.f32.xlu0 %v3192_v1 }
 0xb1b   : > { %v3185_v15 = vpop.xlane.xlu1 %3184 }
 0xb1c   : > { %v3195_v50 = vmul.f32 0.03125, %v3185_v15 }
 0xb1e   : > { %v3199_v57 = vsub.f32 %v3177_v12, %v3195_v50 }
 0xb1f   : > { %v3188_v32 = vpop.xlane.xlu0 %3187 }
 0xb20   : > { %v3196_v51 = vmul.f32 0.03125, %v3188_v32  ;;  %v3203_v53 = vmul.f32 %v3199_v57, %v3199_v57 }
 0xb22   : > { %v3200_v20 = vsub.f32 %v3178_v30, %v3196_v51  ;;  %v3207_v40 = vsel %vm792_vm2, %v3203_v53, 0.0 }
 0xb23   : > { %3208 = vadd.xlane.f32.xlu1 %v3207_v40  ;;  %v3191_v37 = vpop.xlane.xlu1 %3190 }
 0xb24   : > { %v3197_v18 = vmul.f32 0.03125, %v3191_v37  ;;  %v3204_v39 = vmul.f32 %v3200_v20, %v3200_v20 }
 0xb26   : > { %v3201_v24 = vsub.f32 %v3179_v41, %v3197_v18  ;;  %v3210_v23 = vsel %vm792_vm2, %v3204_v39, 0.0 }
 0xb27   : > { %3211 = vadd.xlane.f32.xlu0 %v3210_v23  ;;  %v3194_v55 = vpop.xlane.xlu0 %3193 }
 0xb28   : > { %v3198_v7 = vmul.f32 0.03125, %v3194_v55  ;;  %v3205_v6 = vmul.f32 %v3201_v24, %v3201_v24 }
 0xb2a   : > { %v3202_v56 = vsub.f32 %v3180_v42, %v3198_v7  ;;  %v3213_v60 = vsel %vm792_vm2, %v3205_v6, 0.0 }
 0xb2b   : > { %3214 = vadd.xlane.f32.xlu1 %v3213_v60 }
 0xb2c   : > { %v3206_v61 = vmul.f32 %v3202_v56, %v3202_v56 }
 0xb2e   : > { %v3216_v19 = vsel %vm792_vm2, %v3206_v61, 0.0 }
 0xb2f   : > { %3217 = vadd.xlane.f32.xlu0 %v3216_v19 }
 0xbac   : > { %v3209_v49 = vpop.xlane.xlu1 %3208 }
 0xbad   : > { %v3219_v58 = vmul.f32 0.03125, %v3209_v49 }
 0xbaf   : > { %v3223_v33 = vadd.f32 1e-05, %v3219_v58 }
 0xbb0   : > { %v3212_v26 = vpop.xlane.xlu0 %3211 }
 0xbb1   : > { %4027 = vrsqrt.f32 %v3223_v33  ;;  %v3220_v54 = vmul.f32 0.03125, %v3212_v26 }
 0xbb3   : > { %v3224_v59 = vadd.f32 1e-05, %v3220_v54 }
 0xbb4   : > { %v3215_v43 = vpop.xlane.xlu1 %3214 }
 0xbb5   : > { %4029 = vrsqrt.f32 %v3224_v59  ;;  %v3221_v62 = vmul.f32 0.03125, %v3215_v43 }
 0xbb7   : > { %v3225_v45 = vadd.f32 1e-05, %v3221_v62 }
 0xbb8   : > { %v3218_v0 = vpop.xlane.xlu0 %3217 }
 0xbb9   : > { %4031 = vrsqrt.f32 %v3225_v45  ;;  %v3222_v52 = vmul.f32 0.03125, %v3218_v0 }
 0xbbb   : > { %v3226_v38 = vadd.f32 1e-05, %v3222_v52 }
 0xbbd   : > { %4033 = vrsqrt.f32 %v3226_v38 }
 0xbbe   : > { %v4028_v4 = vpop.eup %4027 }
 0xbbf   : > { %v3231_v8 = vmul.f32 %v4028_v4, %v3199_v57 }
 0xbc1   : > { %v3241_v16 = vmul.f32 %v3543_v5, %v3231_v8 }
 0xbc2   : > { %v4030_v11 = vpop.eup %4029 }
 0xbc3   : > { %v3251_v63 = vadd.f32 %v3544_v9, %v3241_v16  ;;  %v3232_v3 = vmul.f32 %v4030_v11, %v3200_v20 }
 0xbc5   : > { %3255 = vst.msk [vmem:[#allocation2] sm:$0xff] %vm792_vm2, %v3251_v63  ;;  %v3242_v29 = vmul.f32 %v3543_v5, %v3232_v3 }
 0xbc6   : > { %v4032_v13 = vpop.eup %4031 }
 0xbc7   : > { %v3252_v12 = vadd.f32 %v3544_v9, %v3242_v29  ;;  %v3233_v14 = vmul.f32 %v4032_v13, %v3201_v24 }
 0xbc9   : > { %3256 = vst.msk [vmem:[#allocation2 + $0x8] sm:$0xff] %vm792_vm2, %v3252_v12  ;;  %v3243_v17 = vmul.f32 %v3543_v5, %v3233_v14 }
 0xbca   : > { %v4034_v44 = vpop.eup %4033 }
 0xbcb   : > { %v3253_v22 = vadd.f32 %v3544_v9, %v3243_v17  ;;  %v3234_v25 = vmul.f32 %v4034_v44, %v3202_v56 }
 0xbcd   : > { %3257 = vst.msk [vmem:[#allocation2 + $0x10] sm:$0xff] %vm792_vm2, %v3253_v22  ;;  %v3244_v28 = vmul.f32 %v3543_v5, %v3234_v25  ;;  %3262 = sbr.rel (%p3545_p5) target bundleno = 3028 (0xbd4), region = 88 }
 0xbcf   : > { %v3254_v10 = vadd.f32 %v3544_v9, %v3244_v28 }
 0xbd1   : > { %3258 = vst.msk [vmem:[#allocation2 + $0x18] sm:$0xff] %vm792_vm2, %v3254_v10 }
 0xbd2   : > { %3263 = vst.msk [vmem:[%s4863_s3] sm:$0xff] %vm792_vm2, %v3251_v63  ;;  %3264 = vst.msk [vmem:[%s4863_s3 + $0x8] sm:$0xff] %vm792_vm2, %v3252_v12 }
 0xbd3   : > { %3265 = vst.msk [vmem:[%s4863_s3 + $0x10] sm:$0xff] %vm792_vm2, %v3253_v22  ;;  %3266 = vst.msk [vmem:[%s4863_s3 + $0x18] sm:$0xff] %vm792_vm2, %v3254_v10 }
 0xbd4 PF: > { %s4864_s19 = sld [smem:[#allocation3_spill]] }
 0xbda   : > { %s25_s18 = sadd.s32 1, %s4864_s19  }
 0xbdb   : > { %p22_p6 = scmp.ge.s32.totalorder %s25_s18, 6  }
 0xbdd   :  { %24 = sbr.rel (!%p22_p6) target bundleno = 8 (0x8), region = 147 }

</bundles_post_ra>
